<compile_context>
chip_gen: v7x
topology: tpu7x:2x2x1
jax: 0.10.0
libtpu: 0.0.40
codegen_flags: <defaults>
</compile_context>

<pallas_src>
import jax
import jax.numpy as jnp
from jax.experimental import pallas as pl
from jax.experimental.pallas import tpu as pltpu

# Small shapes consistent with BasicBlock (stride=1, in == out channels).
N, C, H, W = 2, 16, 16, 16
WC = W * C            # 256 -> lane-dense (2 x 128 lanes)
HP = H + 2            # H padded by one zero row top/bottom
EPS = 1e-5            # PyTorch BatchNorm2d default eps


# ---------------------------------------------------------------------------
# Kernel: one grid step == one batch image, everything fused.
# ---------------------------------------------------------------------------
def basic_block_kernel(xpad_ref, w1_ref, w2_ref, s1_ref, t1_ref, s2_ref, t2_ref,
                       o_ref, h1pad_ref):
    # xpad_ref : (HP, WC)   input image, H zero-padded, lane layout = x*C + c
    # w1_ref/w2_ref : (3, WC, WC) banded conv weights (one matrix per dy tap)
    # s*/t* : (1, WC) folded BatchNorm scale / bias (tiled over W)
    # o_ref : (H, WC) output rows
    # h1pad_ref : VMEM scratch (HP, WC) for the H-padded intermediate activation

    # ---- conv1 (3x3 SAME) as 3 lane-dense band matmuls, folded BN1, ReLU ----
    acc1 = jnp.zeros((H, WC), jnp.float32)
    for dy in range(3):
        acc1 = acc1 + jnp.dot(xpad_ref[dy:dy + H, :], w1_ref[dy],
                              preferred_element_type=jnp.float32)
    h1 = jnp.maximum(acc1 * s1_ref[...] + t1_ref[...], 0.0)

    # Stage h1 into the H-padded scratch (zero boundary rows, interior = h1).
    zero_row = jnp.zeros((1, WC), jnp.float32)
    h1pad_ref[pl.ds(0, 1), :] = zero_row
    h1pad_ref[pl.ds(HP - 1, 1), :] = zero_row
    h1pad_ref[pl.ds(1, H), :] = h1

    # ---- conv2 (3x3 SAME) as 3 band matmuls, folded BN2 ----
    acc2 = jnp.zeros((H, WC), jnp.float32)
    for dy in range(3):
        acc2 = acc2 + jnp.dot(h1pad_ref[dy:dy + H, :], w2_ref[dy],
                              preferred_element_type=jnp.float32)
    r = acc2 * s2_ref[...] + t2_ref[...]

    # ---- identity shortcut + final ReLU (lane-dense store) ----
    x_in = xpad_ref[pl.ds(1, H), :]
    o_ref[...] = jnp.maximum(r + x_in, 0.0)


# ---------------------------------------------------------------------------
# Wrapper (accepts PyTorch-style NCHW input)
# ---------------------------------------------------------------------------
def basic_block(x_nchw, p):
    x = jnp.transpose(x_nchw, (0, 2, 3, 1)).astype(jnp.float32)    # NCHW -> NHWC
    x_rows = x.reshape(N, H, WC)                                   # fold W,C onto lanes
    xpad = jnp.pad(x_rows, ((0, 0), (1, 1), (0, 0)))               # zero-pad H only

    full = lambda n: (0, 0, 0)
    full2 = lambda n: (0, 0)

    out_rows = pl.pallas_call(
        basic_block_kernel,
        out_shape=jax.ShapeDtypeStruct((N, H, WC), jnp.float32),
        grid_spec=pltpu.PrefetchScalarGridSpec(
            num_scalar_prefetch=0,
            grid=(N,),
            in_specs=[
                pl.BlockSpec((None, HP, WC), lambda n: (n, 0, 0)),   # xpad (per batch)
                pl.BlockSpec((3, WC, WC), full),                     # banded conv1 w
                pl.BlockSpec((3, WC, WC), full),                     # banded conv2 w
                pl.BlockSpec((1, WC), full2),                        # BN1 scale
                pl.BlockSpec((1, WC), full2),                        # BN1 bias
                pl.BlockSpec((1, WC), full2),                        # BN2 scale
                pl.BlockSpec((1, WC), full2),                        # BN2 bias
            ],
            out_specs=pl.BlockSpec((None, H, WC), lambda n: (n, 0, 0)),
            scratch_shapes=[pltpu.VMEM((HP, WC), jnp.float32)],
        ),
        compiler_params=pltpu.CompilerParams(
            dimension_semantics=("parallel",)),
    )(xpad, p["w1b"], p["w2b"], p["s1"], p["t1"], p["s2"], p["t2"])

    out = out_rows.reshape(N, H, W, C)
    return jnp.transpose(out, (0, 3, 1, 2))                         # NHWC -> NCHW


# ---------------------------------------------------------------------------
# Parameter construction / preprocessing
# ---------------------------------------------------------------------------
def band_weights(w_hwio):
    """(3,3,C,C) HWIO conv weights -> (3, W*C, W*C) banded matrices.

    B[dy][x_in*C + ci, x_out*C + co] = w[dy, dx, ci, co] where x_in = x_out + dx - 1,
    so the dx shifts and the zero padding along W are folded into the weights.
    """
    mats = []
    for dy in range(3):
        m = jnp.zeros((WC, WC), jnp.float32)
        for dx in range(3):
            m = m + jnp.kron(jnp.eye(W, k=1 - dx, dtype=jnp.float32),
                             w_hwio[dy, dx].astype(jnp.float32))
        mats.append(m)
    return jnp.stack(mats)


def init_raw_params(key):
    ks = jax.random.split(key, 4)

    def nrm(k, shape, scale=0.1):
        return scale * jax.random.normal(k, shape, jnp.float32)

    def bn(k):
        kg, kb, km, kv = jax.random.split(k, 4)
        return dict(
            gamma=1.0 + 0.1 * jax.random.normal(kg, (C,), jnp.float32),
            beta=0.1 * jax.random.normal(kb, (C,), jnp.float32),
            mean=0.1 * jax.random.normal(km, (C,), jnp.float32),
            var=jnp.abs(jax.random.normal(kv, (C,), jnp.float32)) + 1.0)

    return dict(w1=nrm(ks[0], (3, 3, C, C)), bn1=bn(ks[1]),
                w2=nrm(ks[2], (3, 3, C, C)), bn2=bn(ks[3]))


def prepare_params(raw):
    def fold(bn):
        scale = bn["gamma"] / jnp.sqrt(bn["var"] + EPS)
        bias = bn["beta"] - bn["mean"] * scale
        # tile per-channel params across the W*C lane axis (lane = x*C + c)
        return (jnp.tile(scale, W).reshape(1, WC),
                jnp.tile(bias, W).reshape(1, WC))

    s1, t1 = fold(raw["bn1"])
    s2, t2 = fold(raw["bn2"])
    return dict(w1b=band_weights(raw["w1"]), w2b=band_weights(raw["w2"]),
                s1=s1, t1=t1, s2=s2, t2=t2)


# ---------------------------------------------------------------------------
# Pure-JAX reference of the same forward pass (for validation)
# ---------------------------------------------------------------------------
def reference(x_nchw, raw):
    x = jnp.transpose(x_nchw, (0, 2, 3, 1)).astype(jnp.float32)

    def conv3x3(v, w):
        return jax.lax.conv_general_dilated(
            v, w, (1, 1), ((1, 1), (1, 1)),
            dimension_numbers=("NHWC", "HWIO", "NHWC"))

    def bn(v, p):
        return (v - p["mean"]) / jnp.sqrt(p["var"] + EPS) * p["gamma"] + p["beta"]

    h = jnp.maximum(bn(conv3x3(x, raw["w1"]), raw["bn1"]), 0.0)
    r = bn(conv3x3(h, raw["w2"]), raw["bn2"])
    out = jnp.maximum(r + x, 0.0)        # identity shortcut
    return jnp.transpose(out, (0, 3, 1, 2))


if __name__ == "__main__":
    key = jax.random.PRNGKey(0)
    kx, kp = jax.random.split(key)
    x = jax.random.normal(kx, (N, C, H, W), jnp.float32)   # PyTorch-style NCHW input

    raw = init_raw_params(kp)
    params = prepare_params(raw)

    out = jax.block_until_ready(basic_block(x, params))
    ref = jax.block_until_ready(reference(x, raw))

    assert out.shape == (N, C, H, W), out.shape
    err = float(jnp.max(jnp.abs(out - ref)))
    assert err < 1e-3, f"max abs error vs reference: {err}"
    print("KERNEL_OK")
</pallas_src>

<mosaic_0001>
module attributes {stable_mosaic.version = 11 : i64} {
  func.func @basic_block_kernel(%arg0: i32, %arg1: memref<1x18x256xf32, #tpu.memory_space<vmem>>, %arg2: memref<3x256x256xf32, #tpu.memory_space<vmem>>, %arg3: memref<3x256x256xf32, #tpu.memory_space<vmem>>, %arg4: memref<1x256xf32, #tpu.memory_space<vmem>>, %arg5: memref<1x256xf32, #tpu.memory_space<vmem>>, %arg6: memref<1x256xf32, #tpu.memory_space<vmem>>, %arg7: memref<1x256xf32, #tpu.memory_space<vmem>>, %arg8: memref<1x16x256xf32, #tpu.memory_space<vmem>>, %arg9: memref<18x256xf32, #tpu.memory_space<vmem>>) attributes {dimension_semantics = [#tpu.dimension_semantics<parallel>], iteration_bounds = array<i64: 2>, scalar_prefetch = 0 : i64, scratch_operands = 1 : i64, tpu.core_type = #tpu.core_type<tc>, window_params = [{transform_indices = @transform_0, window_bounds = array<i64: 1, 18, 256>}, {pipeline_mode = #tpu.pipeline_mode<synchronous>, transform_indices = @transform_1, window_bounds = array<i64: 3, 256, 256>}, {pipeline_mode = #tpu.pipeline_mode<synchronous>, transform_indices = @transform_2, window_bounds = array<i64: 3, 256, 256>}, {pipeline_mode = #tpu.pipeline_mode<synchronous>, transform_indices = @transform_3, window_bounds = array<i64: 1, 256>}, {pipeline_mode = #tpu.pipeline_mode<synchronous>, transform_indices = @transform_4, window_bounds = array<i64: 1, 256>}, {pipeline_mode = #tpu.pipeline_mode<synchronous>, transform_indices = @transform_5, window_bounds = array<i64: 1, 256>}, {pipeline_mode = #tpu.pipeline_mode<synchronous>, transform_indices = @transform_6, window_bounds = array<i64: 1, 256>}, {transform_indices = @transform_7, window_bounds = array<i64: 1, 16, 256>}]} {
    %cst = arith.constant 0.000000e+00 : f32
    %0 = vector.broadcast %cst : f32 to vector<16x256xf32>
    %c0 = arith.constant 0 : index
    %c0_0 = arith.constant 0 : index
    %c0_1 = arith.constant 0 : index
    %1 = vector.load %arg1[%c0, %c0_0, %c0_1] : memref<1x18x256xf32, #tpu.memory_space<vmem>>, vector<1x16x256xf32>
    %2 = vector.shape_cast %1 : vector<1x16x256xf32> to vector<16x256xf32>
    %c0_2 = arith.constant 0 : index
    %c0_3 = arith.constant 0 : index
    %c0_4 = arith.constant 0 : index
    %3 = vector.load %arg2[%c0_2, %c0_3, %c0_4] : memref<3x256x256xf32, #tpu.memory_space<vmem>>, vector<1x256x256xf32>
    %4 = vector.shape_cast %3 : vector<1x256x256xf32> to vector<256x256xf32>
    %cst_5 = arith.constant dense<0.000000e+00> : vector<16x256xf32>
    %5 = tpu.matmul %2, %4, %cst_5 {dimension_numbers = #tpu.dot_dimension_numbers<[1], [0], [0], [1], [0, 0, 1, 1], [], []>} : vector<16x256xf32>, vector<256x256xf32>, vector<16x256xf32> -> vector<16x256xf32>
    %6 = arith.addf %0, %5 : vector<16x256xf32>
    %c0_6 = arith.constant 0 : index
    %c1 = arith.constant 1 : index
    %c0_7 = arith.constant 0 : index
    %7 = vector.load %arg1[%c0_6, %c1, %c0_7] : memref<1x18x256xf32, #tpu.memory_space<vmem>>, vector<1x16x256xf32>
    %8 = vector.shape_cast %7 : vector<1x16x256xf32> to vector<16x256xf32>
    %c1_8 = arith.constant 1 : index
    %c0_9 = arith.constant 0 : index
    %c0_10 = arith.constant 0 : index
    %9 = vector.load %arg2[%c1_8, %c0_9, %c0_10] : memref<3x256x256xf32, #tpu.memory_space<vmem>>, vector<1x256x256xf32>
    %10 = vector.shape_cast %9 : vector<1x256x256xf32> to vector<256x256xf32>
    %cst_11 = arith.constant dense<0.000000e+00> : vector<16x256xf32>
    %11 = tpu.matmul %8, %10, %cst_11 {dimension_numbers = #tpu.dot_dimension_numbers<[1], [0], [0], [1], [0, 0, 1, 1], [], []>} : vector<16x256xf32>, vector<256x256xf32>, vector<16x256xf32> -> vector<16x256xf32>
    %12 = arith.addf %6, %11 : vector<16x256xf32>
    %c0_12 = arith.constant 0 : index
    %c2 = arith.constant 2 : index
    %c0_13 = arith.constant 0 : index
    %13 = vector.load %arg1[%c0_12, %c2, %c0_13] : memref<1x18x256xf32, #tpu.memory_space<vmem>>, vector<1x16x256xf32>
    %14 = vector.shape_cast %13 : vector<1x16x256xf32> to vector<16x256xf32>
    %c2_14 = arith.constant 2 : index
    %c0_15 = arith.constant 0 : index
    %c0_16 = arith.constant 0 : index
    %15 = vector.load %arg2[%c2_14, %c0_15, %c0_16] : memref<3x256x256xf32, #tpu.memory_space<vmem>>, vector<1x256x256xf32>
    %16 = vector.shape_cast %15 : vector<1x256x256xf32> to vector<256x256xf32>
    %cst_17 = arith.constant dense<0.000000e+00> : vector<16x256xf32>
    %17 = tpu.matmul %14, %16, %cst_17 {dimension_numbers = #tpu.dot_dimension_numbers<[1], [0], [0], [1], [0, 0, 1, 1], [], []>} : vector<16x256xf32>, vector<256x256xf32>, vector<16x256xf32> -> vector<16x256xf32>
    %18 = arith.addf %12, %17 : vector<16x256xf32>
    %c0_18 = arith.constant 0 : index
    %c0_19 = arith.constant 0 : index
    %19 = vector.load %arg4[%c0_18, %c0_19] : memref<1x256xf32, #tpu.memory_space<vmem>>, vector<1x256xf32>
    %20 = vector.broadcast %19 : vector<1x256xf32> to vector<16x256xf32>
    %21 = arith.mulf %18, %20 : vector<16x256xf32>
    %c0_20 = arith.constant 0 : index
    %c0_21 = arith.constant 0 : index
    %22 = vector.load %arg5[%c0_20, %c0_21] : memref<1x256xf32, #tpu.memory_space<vmem>>, vector<1x256xf32>
    %23 = vector.broadcast %22 : vector<1x256xf32> to vector<16x256xf32>
    %24 = arith.addf %21, %23 : vector<16x256xf32>
    %cst_22 = arith.constant 0.000000e+00 : f32
    %25 = vector.broadcast %cst_22 : f32 to vector<16x256xf32>
    %26 = arith.maximumf %24, %25 : vector<16x256xf32>
    %cst_23 = arith.constant 0.000000e+00 : f32
    %27 = vector.broadcast %cst_23 : f32 to vector<1x256xf32>
    %c0_24 = arith.constant 0 : index
    %c0_25 = arith.constant 0 : index
    %28 = vector.load %arg9[%c0_24, %c0_25] : memref<18x256xf32, #tpu.memory_space<vmem>>, vector<1x256xf32>
    tpu.vector_store %arg9[%c0_24, %c0_25], %27 {strides = array<i32>} : memref<18x256xf32, #tpu.memory_space<vmem>>, vector<1x256xf32>,
    %c17 = arith.constant 17 : index
    %c0_26 = arith.constant 0 : index
    %29 = vector.load %arg9[%c17, %c0_26] : memref<18x256xf32, #tpu.memory_space<vmem>>, vector<1x256xf32>
    tpu.vector_store %arg9[%c17, %c0_26], %27 {strides = array<i32>} : memref<18x256xf32, #tpu.memory_space<vmem>>, vector<1x256xf32>,
    %c1_27 = arith.constant 1 : index
    %c0_28 = arith.constant 0 : index
    %30 = vector.load %arg9[%c1_27, %c0_28] : memref<18x256xf32, #tpu.memory_space<vmem>>, vector<16x256xf32>
    tpu.vector_store %arg9[%c1_27, %c0_28], %26 {strides = array<i32>} : memref<18x256xf32, #tpu.memory_space<vmem>>, vector<16x256xf32>,
    %cst_29 = arith.constant 0.000000e+00 : f32
    %31 = vector.broadcast %cst_29 : f32 to vector<16x256xf32>
    %c0_30 = arith.constant 0 : index
    %c0_31 = arith.constant 0 : index
    %32 = vector.load %arg9[%c0_30, %c0_31] : memref<18x256xf32, #tpu.memory_space<vmem>>, vector<16x256xf32>
    %c0_32 = arith.constant 0 : index
    %c0_33 = arith.constant 0 : index
    %c0_34 = arith.constant 0 : index
    %33 = vector.load %arg3[%c0_32, %c0_33, %c0_34] : memref<3x256x256xf32, #tpu.memory_space<vmem>>, vector<1x256x256xf32>
    %34 = vector.shape_cast %33 : vector<1x256x256xf32> to vector<256x256xf32>
    %cst_35 = arith.constant dense<0.000000e+00> : vector<16x256xf32>
    %35 = tpu.matmul %32, %34, %cst_35 {dimension_numbers = #tpu.dot_dimension_numbers<[1], [0], [0], [1], [0, 0, 1, 1], [], []>} : vector<16x256xf32>, vector<256x256xf32>, vector<16x256xf32> -> vector<16x256xf32>
    %36 = arith.addf %31, %35 : vector<16x256xf32>
    %c1_36 = arith.constant 1 : index
    %c0_37 = arith.constant 0 : index
    %37 = vector.load %arg9[%c1_36, %c0_37] : memref<18x256xf32, #tpu.memory_space<vmem>>, vector<16x256xf32>
    %c1_38 = arith.constant 1 : index
    %c0_39 = arith.constant 0 : index
    %c0_40 = arith.constant 0 : index
    %38 = vector.load %arg3[%c1_38, %c0_39, %c0_40] : memref<3x256x256xf32, #tpu.memory_space<vmem>>, vector<1x256x256xf32>
    %39 = vector.shape_cast %38 : vector<1x256x256xf32> to vector<256x256xf32>
    %cst_41 = arith.constant dense<0.000000e+00> : vector<16x256xf32>
    %40 = tpu.matmul %37, %39, %cst_41 {dimension_numbers = #tpu.dot_dimension_numbers<[1], [0], [0], [1], [0, 0, 1, 1], [], []>} : vector<16x256xf32>, vector<256x256xf32>, vector<16x256xf32> -> vector<16x256xf32>
    %41 = arith.addf %36, %40 : vector<16x256xf32>
    %c2_42 = arith.constant 2 : index
    %c0_43 = arith.constant 0 : index
    %42 = vector.load %arg9[%c2_42, %c0_43] : memref<18x256xf32, #tpu.memory_space<vmem>>, vector<16x256xf32>
    %c2_44 = arith.constant 2 : index
    %c0_45 = arith.constant 0 : index
    %c0_46 = arith.constant 0 : index
    %43 = vector.load %arg3[%c2_44, %c0_45, %c0_46] : memref<3x256x256xf32, #tpu.memory_space<vmem>>, vector<1x256x256xf32>
    %44 = vector.shape_cast %43 : vector<1x256x256xf32> to vector<256x256xf32>
    %cst_47 = arith.constant dense<0.000000e+00> : vector<16x256xf32>
    %45 = tpu.matmul %42, %44, %cst_47 {dimension_numbers = #tpu.dot_dimension_numbers<[1], [0], [0], [1], [0, 0, 1, 1], [], []>} : vector<16x256xf32>, vector<256x256xf32>, vector<16x256xf32> -> vector<16x256xf32>
    %46 = arith.addf %41, %45 : vector<16x256xf32>
    %c0_48 = arith.constant 0 : index
    %c0_49 = arith.constant 0 : index
    %47 = vector.load %arg6[%c0_48, %c0_49] : memref<1x256xf32, #tpu.memory_space<vmem>>, vector<1x256xf32>
    %48 = vector.broadcast %47 : vector<1x256xf32> to vector<16x256xf32>
    %49 = arith.mulf %46, %48 : vector<16x256xf32>
    %c0_50 = arith.constant 0 : index
    %c0_51 = arith.constant 0 : index
    %50 = vector.load %arg7[%c0_50, %c0_51] : memref<1x256xf32, #tpu.memory_space<vmem>>, vector<1x256xf32>
    %51 = vector.broadcast %50 : vector<1x256xf32> to vector<16x256xf32>
    %52 = arith.addf %49, %51 : vector<16x256xf32>
    %c0_52 = arith.constant 0 : index
    %c1_53 = arith.constant 1 : index
    %c0_54 = arith.constant 0 : index
    %53 = vector.load %arg1[%c0_52, %c1_53, %c0_54] : memref<1x18x256xf32, #tpu.memory_space<vmem>>, vector<1x16x256xf32>
    %54 = vector.shape_cast %53 : vector<1x16x256xf32> to vector<16x256xf32>
    %55 = arith.addf %52, %54 : vector<16x256xf32>
    %cst_55 = arith.constant 0.000000e+00 : f32
    %56 = vector.broadcast %cst_55 : f32 to vector<16x256xf32>
    %57 = arith.maximumf %55, %56 : vector<16x256xf32>
    %c0_56 = arith.constant 0 : index
    %c0_57 = arith.constant 0 : index
    %c0_58 = arith.constant 0 : index
    %58 = vector.load %arg8[%c0_56, %c0_57, %c0_58] : memref<1x16x256xf32, #tpu.memory_space<vmem>>, vector<1x16x256xf32>
    %59 = vector.shape_cast %58 : vector<1x16x256xf32> to vector<16x256xf32>
    %60 = vector.shape_cast %57 : vector<16x256xf32> to vector<1x16x256xf32>
    tpu.vector_store %arg8[%c0_56, %c0_57, %c0_58], %60 {strides = array<i32>} : memref<1x16x256xf32, #tpu.memory_space<vmem>>, vector<1x16x256xf32>,
    return
  }
  func.func @transform_0(%arg0: i32) -> (i32, i32, i32) {
    %c0_i32 = arith.constant 0 : i32
    %c0_i32_0 = arith.constant 0 : i32
    %c0_i32_1 = arith.constant 0 : i32
    return %arg0, %c0_i32, %c0_i32_0 : i32, i32, i32
  }
  func.func @transform_1(%arg0: i32) -> (i32, i32, i32) {
    %c0_i32 = arith.constant 0 : i32
    %c0_i32_0 = arith.constant 0 : i32
    %c0_i32_1 = arith.constant 0 : i32
    %c0_i32_2 = arith.constant 0 : i32
    return %c0_i32, %c0_i32_0, %c0_i32_1 : i32, i32, i32
  }
  func.func @transform_2(%arg0: i32) -> (i32, i32, i32) {
    %c0_i32 = arith.constant 0 : i32
    %c0_i32_0 = arith.constant 0 : i32
    %c0_i32_1 = arith.constant 0 : i32
    %c0_i32_2 = arith.constant 0 : i32
    return %c0_i32, %c0_i32_0, %c0_i32_1 : i32, i32, i32
  }
  func.func @transform_3(%arg0: i32) -> (i32, i32) {
    %c0_i32 = arith.constant 0 : i32
    %c0_i32_0 = arith.constant 0 : i32
    %c0_i32_1 = arith.constant 0 : i32
    return %c0_i32, %c0_i32_0 : i32, i32
  }
  func.func @transform_4(%arg0: i32) -> (i32, i32) {
    %c0_i32 = arith.constant 0 : i32
    %c0_i32_0 = arith.constant 0 : i32
    %c0_i32_1 = arith.constant 0 : i32
    return %c0_i32, %c0_i32_0 : i32, i32
  }
  func.func @transform_5(%arg0: i32) -> (i32, i32) {
    %c0_i32 = arith.constant 0 : i32
    %c0_i32_0 = arith.constant 0 : i32
    %c0_i32_1 = arith.constant 0 : i32
    return %c0_i32, %c0_i32_0 : i32, i32
  }
  func.func @transform_6(%arg0: i32) -> (i32, i32) {
    %c0_i32 = arith.constant 0 : i32
    %c0_i32_0 = arith.constant 0 : i32
    %c0_i32_1 = arith.constant 0 : i32
    return %c0_i32, %c0_i32_0 : i32, i32
  }
  func.func @transform_7(%arg0: i32) -> (i32, i32, i32) {
    %c0_i32 = arith.constant 0 : i32
    %c0_i32_0 = arith.constant 0 : i32
    %c0_i32_1 = arith.constant 0 : i32
    return %arg0, %c0_i32, %c0_i32_0 : i32, i32, i32
  }
}

</mosaic_0001>

<bundles_post_ra>
// kernel: tpu_custom_call.1
= control target key start
LH: loop header
LB: loop body
LE: loop exit
PB: predicated region body
PF: predicated region fallthrough
CT: control target
= control target key end

     0   :  { %12 = vsyncpa [#allocation4], 0  ;;  %s2436_s0 = inlined_call_operand.vmem [shape: f32[2,18,256], index: 0, kind: input, shape index: {}]   ;;  %s2437_s1 = inlined_call_operand.hbm [shape: f32[3,256,256], index: 1, kind: input, shape index: {}]   ;;  %s2438_s2 = inlined_call_operand.hbm [shape: f32[3,256,256], index: 2, kind: input, shape index: {}]   ;;  %s2439_s3 = inlined_call_operand.vmem [shape: f32[1,256], index: 3, kind: input, shape index: {}]   ;;  %s2440_s4 = inlined_call_operand.vmem [shape: f32[1,256], index: 4, kind: input, shape index: {}]   ;;  %s2441_s5 = inlined_call_operand.vmem [shape: f32[1,256], index: 5, kind: input, shape index: {}]   ;;  %s2442_s6 = inlined_call_operand.vmem [shape: f32[1,256], index: 6, kind: input, shape index: {}]   ;;  %s2443_s7 = inlined_call_operand.hbm [shape: f32[2,16,256], index: 7, kind: output, shape index: {}]  }
   0x1   :  { %13 = vsyncpa [#allocation7], 0 }
   0x2   :  { %14 = vsyncpa [#allocation5], 0 }
   0x3   :  { %16 = vsyncpa [#allocation5 + $0x1], 0  ;;  %s2161_s24 = smov 0   ;;  %s2163_s25 = smov 0  }
   0x4   :  { %s2165_s26 = smov 0   ;;  %s2167_s27 = smov 0  }
   0x5 LB: > { %s2182_s28 = sadd.s32 4294967295, %s2111_s27   ;;  %s1503_s29 = sadd.s32 4294967294, %s2111_s27   ;;  %s2111_s27 = sphi %s2167_s27, %s2463_s27   ;;  %s2107_s26 = sphi %s2165_s26, %s2462_s26   ;;  %s2103_s25 = sphi %s2163_s25, %s2461_s25   ;;  %s2099_s24 = sphi %s2161_s24, %s2460_s24  }
   0x6   : > { %s2186_s30 = sadd.s32 1, %s2111_s27   ;;  %s181_s8 = sadd.s32 1, %s2107_s26 }
   0x7   : > { %s178_s9 = ssub.s32 %s2111_s27, %s2186_s30  ;;  %p191_p0 = scmp.ne.s32.totalorder %s2107_s26, %s2103_s25 }
   0x8   : > { %p179_p1 = scmp.eq.s32.totalorder %s178_s9, 0  ;;  %p192_p2 = scmp.eq.s32.totalorder %s2182_s28, 1 }
   0x9   : > { %p197_p3 = scmp.ne.s32.totalorder %s2103_s25, %s2099_s24  ;;  %p198_p4 = scmp.eq.s32.totalorder %s1503_s29, 1 }
   0xa   : > { %s2197_s10 = scalar_select %p179_p1, %s2107_s26, %s181_s8  }
   0xb   : > { %p2199_p5 = por %p192_p2, %p191_p0  ;;  %p2203_p6 = por %p198_p4, %p197_p3 }
   0xc   : > { %2447 = sst [smem:[#allocation12_spill]] %s2197_s10  ;;  %p1504_p7 = scmp.ge.s32.totalorder %s2111_s27, 1 }
   0xd   : > { %s2448_s11 = scalar_select %p2199_p5, 1, 0 }
   0xe   : > { %s2449_s12 = scalar_select %p2203_p6, 1, 0 }
   0xf   : > { %p205_p8 = scmp.lt.s32.totalorder %s2111_s27, 3  ;;  %p2444_p9 = scmp.eq.s32.totalorder %s2182_s28, 0 }
  0x10   : > { %s2113_s14 = smov [#allocation3]   ;;  %s2114_s17 = smov [#allocation6]  }
  0x11   : > { %p2210_p10 = pnand %p1504_p7, %p205_p8  ;;  %s217_s15 = sshll.u32 %s2113_s14, 4  ;;  %s218_s15 = int_to_ptr.vmem [resolvable:$true] %s217_s15 }
  0x12   : > { %s230_s18 = sshll.u32 %s2114_s17, 4  ;;  %s1985_s21 = scalar_lea.hbm %s2437_s1, 24576  ;;  %s2222_s18 = int_to_ptr.vmem [resolvable:$true] %s230_s18 }
  0x13   : > { %s2450_s13 = scalar_select %p2210_p10, 1, 0 }
  0x14   : > { %p1930_p11 = pneg %p2210_p10  ;;  %p1986_p13 = scmp.ne.s32.totalorder %s2437_s1, %s1985_s21 }
  0x15   : > { %p1992_p3 = scmp.lt.u32.totalorder %s1985_s21, %s2437_s1 }
  0x16   : > { %p2218_p12 = pnand %p2444_p9, %p1930_p11 }
  0x18   : > { %p1987_p0 = pneg %p2218_p12 }
  0x1a   : > { %p1988_p1 = pnand %p1987_p0, %p1986_p13 }
  0x1c   : > { %p1989_p2 = pneg %p1988_p1 }
  0x1e   : > { %p1994_p4 = pnand %p1992_p3, %p1989_p2 }
  0x20   : > { %1997 = shalt.err (!%p1994_p4)
}
  0x21   : > { %s1998_s9 = scalar_lea.vmem %s218_s15, 24576  ;;  %p2006_p9 = scmp.lt.s32.totalorder %s218_s15, %s218_s15 }
  0x22   : > { %p1999_p7 = scmp.ne.s32.totalorder %s218_s15, %s1998_s9  ;;  %p2007_p6 = scmp.lt.s32.totalorder %s1998_s9, %s1998_s9 }
  0x24   : > { %p2001_p8 = pnand %p1999_p7, %p1987_p0  ;;  %p2008_p5 = por %p2007_p6, %p2006_p9 }
  0x26   : > { %p2002_p11 = pneg %p2001_p8 }
  0x28   : > { %p2009_p10 = pnand %p2008_p5, %p2002_p11 }
  0x2a   : > { %2012 = shalt.err (!%p2009_p10)
}
  0x2b   : > { %s2115_s14 = smov 256   ;;  %s2116_s17 = smov 16  }
  0x2c   : > { %1933 = dma.hbm_to_vmem [thread:$0]  (!%p2218_p12), %s2437_s1, 24576, %s218_s15, [#allocation4], %s2115_s14, %s2115_s14, %s2116_s17  }
  0x2d   : > { %s2013_s23 = scalar_lea.hbm %s2438_s2, 24576 }
  0x2e   : > { %p2014_p13 = scmp.ne.s32.totalorder %s2438_s2, %s2013_s23  ;;  %p2020_p9 = scmp.lt.u32.totalorder %s2013_s23, %s2438_s2 }
  0x30   : > { %p2016_p5 = pnand %p2014_p13, %p1987_p0 }
  0x32   : > { %p2017_p6 = pneg %p2016_p5 }
  0x34   : > { %p2022_p10 = pnand %p2020_p9, %p2017_p6 }
  0x36   : > { %2025 = shalt.err (!%p2022_p10)
}
  0x37   : > { %s2026_s15 = scalar_lea.vmem %s2222_s18, 24576  ;;  %p2034_p4 = scmp.lt.s32.totalorder %s2222_s18, %s2222_s18 }
  0x38   : > { %p2027_p1 = scmp.ne.s32.totalorder %s2222_s18, %s2026_s15  ;;  %p2035_p7 = scmp.lt.s32.totalorder %s2026_s15, %s2026_s15 }
  0x3a   : > { %p2029_p2 = pnand %p2027_p1, %p1987_p0  ;;  %p2036_p8 = por %p2035_p7, %p2034_p4 }
  0x3c   : > { %p2030_p3 = pneg %p2029_p2 }
  0x3e   : > { %p2037_p11 = pnand %p2036_p8, %p2030_p3 }
  0x40   : > { %2040 = shalt.err (!%p2037_p11)
}
  0x41   : > { %1936 = dma.hbm_to_vmem [thread:$0]  (!%p2218_p12), %s2438_s2, 24576, %s2222_s18, [#allocation7], %s2115_s14, %s2115_s14, %s2116_s17  }
  0x42   : > { %p2452_p13 = scmp.ne.s32.totalorder %s2450_s13, 0 }
  0x43   : > { %p2453_p5 = scmp.eq.s32.totalorder (!%p2452_p13), %s2182_s28, 0 }
  0x44   : > { %266 = sbr.rel (%p2452_p13) target bundleno = 876 (0x36c), region = 48 }
  0x4b   : > { %2086 = dma.done.wait (%p2453_p5), [#allocation4], 24576   ;;  %p2454_p0 = pmov %p2453_p5 }
  0x4d   : > { %2088 = vsyncadd (%p2454_p0), [#allocation4], 4294942720  ;;  %p2455_p6 = pmov %p2454_p0 }
  0x4e   : > { %p2456_p9 = pmov %p2454_p0 }
  0x4f   : > { %2090 = dma.done.wait (%p2455_p6), [#allocation7], 24576  }
  0x50   : > { %2092 = vsyncadd (%p2456_p9), [#allocation7], 4294942720  ;;  %v381_v0 = vld [vmem:[#allocation3 + $0x208] sm:$0xff]  ;;  %v383_v1 = vld [vmem:[#allocation3 + $0x218] sm:$0xff]  ;;  %p302_p12 = scmp.lt.s32.totalorder %s2182_s28, 1  ;;  %vm450_vm0 = vcmask 1046528  }
  0x51   : > { %v380_v2 = vld [vmem:[#allocation3 + $0x200] sm:$0xff]  ;;  %v1519_v3 = vpack.c.bf16 %v383_v1, %v381_v0  ;;  %v382_v4 = vld [vmem:[#allocation3 + $0x210] sm:$0xff]  ;;  %v385_v5 = vld [vmem:[#allocation3 + $0x228] sm:$0xff]  ;;  %vm692_vm1 = vcmask 1045504   ;;  %vm837_vm3 = vcmask 1040384   ;;  %s299_s10 = sand.u32 1, %s2103_s25  }
  0x52   : > { %v387_v6 = vld [vmem:[#allocation3 + $0x238] sm:$0xff]  ;;  %v1521_v7 = vpack.c.bf16 %v382_v4, %v380_v2  ;;  %v384_v9 = vld [vmem:[#allocation3 + $0x220] sm:$0xff]  ;;  %v386_v10 = vld [vmem:[#allocation3 + $0x230] sm:$0xff]  ;;  %s303_s13 = scalar_select %p302_p12, %s2182_s28, 1 }
  0x53   : > { %v1523_v8 = vpack.c.bf16 %v387_v6, %v385_v5  ;;  %v389_v11 = vld [vmem:[#allocation3 + $0x248] sm:$0xff]  ;;  %1520 = vmatprep.subr.bf16.mxu0 %v1519_v3  ;;  %v391_v12 = vld [vmem:[#allocation3 + $0x258] sm:$0xff]  ;;  %v1525_v13 = vpack.c.bf16 %v386_v10, %v384_v9  ;;  %v388_v15 = vld [vmem:[#allocation3 + $0x240] sm:$0xff]  ;;  %s1511_s19 = sshll.u32 %s299_s10, 5  ;;  %s1518_s18 = sshll.u32 %s2182_s28, 9 }
  0x54   : > { %1522 = vmatpush1.bf16.msra.mxu0 %v1521_v7  ;;  %v1527_v14 = vpack.c.bf16 %v391_v12, %v389_v11  ;;  %v390_v16 = vld [vmem:[#allocation3 + $0x250] sm:$0xff]  ;;  %v393_v17 = vld [vmem:[#allocation3 + $0x268] sm:$0xff]  ;;  %v395_v18 = vld [vmem:[#allocation3 + $0x278] sm:$0xff]  ;;  %s1919_s16 = smul.u32 48, %s303_s13  ;;  %s301_s13 = scalar_lea.vmem [#allocation8], %s1511_s19 }
  0x55   : > { %1524 = vmatprep.subr.bf16.mxu0 %v1523_v8  ;;  %v1529_v19 = vpack.c.bf16 %v390_v16, %v388_v15  ;;  %v1531_v20 = vpack.c.bf16 %v395_v18, %v393_v17  ;;  %v392_v21 = vld [vmem:[#allocation3 + $0x260] sm:$0xff]  ;;  %v394_v22 = vld [vmem:[#allocation3 + $0x270] sm:$0xff]  ;;  %v397_v23 = vld [vmem:[#allocation3 + $0x288] sm:$0xff]  ;;  %s2391_s20 = scalar_lea.hbm %s2443_s7, %s1518_s18  ;;  %s2395_s21 = scalar_lea.sflag [#allocation5], %s299_s10 }
  0x56   : > { %v399_v24 = vld [vmem:[#allocation3 + $0x298] sm:$0xff]  ;;  %v1533_v25 = vpack.c.bf16 %v394_v22, %v392_v21  ;;  %v396_v27 = vld [vmem:[#allocation3 + $0x280] sm:$0xff]  ;;  %v398_v28 = vld [vmem:[#allocation3 + $0x290] sm:$0xff]  ;;  %s2286_s17 = scalar_lea.vmem %s2436_s0, %s1919_s16  ;;  %s1419_s16 = sshll.u32 %s301_s13, 4  ;;  %s2386_s16 = int_to_ptr.vmem [resolvable:$true] %s1419_s16 }
  0x57   : > { %v1535_v26 = vpack.c.bf16 %v399_v24, %v397_v23  ;;  %v401_v29 = vld [vmem:[#allocation3 + $0x2a8] sm:$0xff]  ;;  %v403_v30 = vld [vmem:[#allocation3 + $0x2b8] sm:$0xff]  ;;  %v1537_v31 = vpack.c.bf16 %v398_v28, %v396_v27  ;;  %v400_v33 = vld [vmem:[#allocation3 + $0x2a0] sm:$0xff]  ;;  %s2041_s28 = scalar_lea.vmem %s2386_s16, 512  ;;  %p2457_p1 = scmp.ne.s32.totalorder %s2448_s11, 0 }
  0x58   : > { %1526 = vmatpush1.bf16.msra.mxu0 %v1525_v13  ;;  %v1539_v32 = vpack.c.bf16 %v403_v30, %v401_v29  ;;  %v402_v34 = vld [vmem:[#allocation3 + $0x2b0] sm:$0xff]  ;;  %v405_v35 = vld [vmem:[#allocation3 + $0x2c8] sm:$0xff]  ;;  %v407_v36 = vld [vmem:[#allocation3 + $0x2d8] sm:$0xff]  ;;  %p2042_p10 = scmp.ne.s32.totalorder %s2386_s16, %s2041_s28  ;;  %s2118_s22 = smov [#allocation8]  }
  0x59   : > { %1528 = vmatprep.subr.bf16.mxu0 %v1527_v14  ;;  %v1541_v37 = vpack.c.bf16 %v402_v34, %v400_v33  ;;  %v404_v38 = vld [vmem:[#allocation3 + $0x2c0] sm:$0xff]  ;;  %v1543_v39 = vpack.c.bf16 %v407_v36, %v405_v35  ;;  %v406_v40 = vld [vmem:[#allocation3 + $0x2d0] sm:$0xff]  ;;  %v2289_v41 = vld [vmem:[%s2286_s17 + $0x18] sm:$0xff]  ;;  %s2045_s23 = sshll.u32 %s2118_s22, 4  ;;  %s2046_s23 = int_to_ptr.vmem [resolvable:$false] %s2045_s23 }
  0x5a   : > { %v376_v42 = vld [vmem:[%s2286_s17 + $0x8] sm:$0xfe]  ;;  %v409_v43 = vld [vmem:[#allocation3 + $0x2e8] sm:$0xff]  ;;  %v455_v46 = vrot.slane %v2289_v41, 1  ;;  %v1545_v47 = vpack.c.bf16 %v406_v40, %v404_v38  ;;  %v408_v50 = vld [vmem:[#allocation3 + $0x2e0] sm:$0xff]  ;;  %p2043_p2 = pnand %p2042_p10, %p2457_p1  ;;  %s2047_s29 = scalar_lea.vmem %s2046_s23, 1024 }
  0x5b   : > { %v411_v44 = vld [vmem:[#allocation3 + $0x2f8] sm:$0xff]  ;;  %v454_v45 = vrot.slane %v376_v42, 1  ;;  %v410_v51 = vld [vmem:[#allocation3 + $0x2f0] sm:$0xff]  ;;  %v413_v52 = vld [vmem:[#allocation3 + $0x308] sm:$0xff]  ;;  %p2048_p4 = scmp.lt.s32.totalorder %s2386_s16, %s2046_s23  ;;  %p2049_p7 = scmp.lt.s32.totalorder %s2047_s29, %s2041_s28 }
  0x5c   : > { %1530 = vmatpush1.bf16.msra.mxu0 %v1529_v19  ;;  %v1547_v49 = vpack.c.bf16 %v411_v44, %v409_v43  ;;  %v415_v53 = vld [vmem:[#allocation3 + $0x318] sm:$0xff]  ;;  %v1549_v54 = vpack.c.bf16 %v410_v51, %v408_v50  ;;  %v412_v56 = vld [vmem:[#allocation3 + $0x300] sm:$0xff]  ;;  %v414_v57 = vld [vmem:[#allocation3 + $0x310] sm:$0xff]  ;;  %p2044_p3 = pneg %p2043_p2 }
  0x5d   : > { %1532 = vmatprep.subr.bf16.mxu0 %v1531_v20  ;;  %v456_v48 = vsel %vm450_vm0, %v454_v45, %v455_v46  ;;  %v1551_v55 = vpack.c.bf16 %v415_v53, %v413_v52  ;;  %v417_v58 = vld [vmem:[#allocation3 + $0x328] sm:$0xff]  ;;  %v419_v59 = vld [vmem:[#allocation3 + $0x338] sm:$0xff]  ;;  %v1553_v60 = vpack.c.bf16 %v414_v57, %v412_v56  ;;  %v416_v62 = vld [vmem:[#allocation3 + $0x320] sm:$0xff]  ;;  %p2050_p8 = por %p2049_p7, %p2048_p4 }
  0x5e   : > { %529 = vmatprep.mubr.f32.mxu0 %v456_v48  ;;  %v1555_v61 = vpack.c.bf16 %v419_v59, %v417_v58  ;;  %v418_v63 = vld [vmem:[#allocation3 + $0x330] sm:$0xff]  ;;  %v421_v0 = vld [vmem:[#allocation3 + $0x348] sm:$0xff]  ;;  %v423_v1 = vld [vmem:[#allocation3 + $0x358] sm:$0xff] }
  0x5f   : > { %v1557_v2 = vpack.c.bf16 %v418_v63, %v416_v62  ;;  %v1559_v3 = vpack.c.bf16 %v423_v1, %v421_v0  ;;  %v420_v4 = vld [vmem:[#allocation3 + $0x340] sm:$0xff]  ;;  %v422_v5 = vld [vmem:[#allocation3 + $0x350] sm:$0xff]  ;;  %v425_v6 = vld [vmem:[#allocation3 + $0x368] sm:$0xff]  ;;  %p2051_p11 = pnand %p2050_p8, %p2044_p3 }
  0x60   : > { %1534 = vmatpush1.bf16.msra.mxu0 %v1533_v25  ;;  %v427_v7 = vld [vmem:[#allocation3 + $0x378] sm:$0xff]  ;;  %v1561_v8 = vpack.c.bf16 %v422_v5, %v420_v4  ;;  %v424_v10 = vld [vmem:[#allocation3 + $0x360] sm:$0xff]  ;;  %v426_v11 = vld [vmem:[#allocation3 + $0x370] sm:$0xff] }
  0x61   : > { %1536 = vmatprep.subr.bf16.mxu0 %v1535_v26  ;;  %v1563_v9 = vpack.c.bf16 %v427_v7, %v425_v6  ;;  %v429_v12 = vld [vmem:[#allocation3 + $0x388] sm:$0xff]  ;;  %v431_v13 = vld [vmem:[#allocation3 + $0x398] sm:$0xff]  ;;  %v1565_v14 = vpack.c.bf16 %v426_v11, %v424_v10  ;;  %v428_v16 = vld [vmem:[#allocation3 + $0x380] sm:$0xff] }
  0x62   : > { %v1567_v15 = vpack.c.bf16 %v431_v13, %v429_v12  ;;  %v430_v17 = vld [vmem:[#allocation3 + $0x390] sm:$0xff]  ;;  %v433_v18 = vld [vmem:[#allocation3 + $0x3a8] sm:$0xff]  ;;  %v435_v19 = vld [vmem:[#allocation3 + $0x3b8] sm:$0xff] }
  0x63   : > { %v1569_v20 = vpack.c.bf16 %v430_v17, %v428_v16  ;;  %v1571_v21 = vpack.c.bf16 %v435_v19, %v433_v18  ;;  %v432_v22 = vld [vmem:[#allocation3 + $0x3a0] sm:$0xff]  ;;  %v434_v23 = vld [vmem:[#allocation3 + $0x3b0] sm:$0xff]  ;;  %v437_v24 = vld [vmem:[#allocation3 + $0x3c8] sm:$0xff] }
  0x64   : > { %1538 = vmatpush1.bf16.msra.mxu0 %v1537_v31  ;;  %v439_v25 = vld [vmem:[#allocation3 + $0x3d8] sm:$0xff]  ;;  %v1573_v26 = vpack.c.bf16 %v434_v23, %v432_v22  ;;  %v436_v28 = vld [vmem:[#allocation3 + $0x3c0] sm:$0xff]  ;;  %v438_v29 = vld [vmem:[#allocation3 + $0x3d0] sm:$0xff] }
  0x65   : > { %1540 = vmatprep.subr.bf16.mxu0 %v1539_v32  ;;  %v1575_v27 = vpack.c.bf16 %v439_v25, %v437_v24  ;;  %v441_v30 = vld [vmem:[#allocation3 + $0x3e8] sm:$0xff]  ;;  %v443_v31 = vld [vmem:[#allocation3 + $0x3f8] sm:$0xff]  ;;  %v1577_v32 = vpack.c.bf16 %v438_v29, %v436_v28  ;;  %v440_v33 = vld [vmem:[#allocation3 + $0x3e0] sm:$0xff] }
  0x66   : > { %v1579_v34 = vpack.c.bf16 %v443_v31, %v441_v30  ;;  %v442_v35 = vld [vmem:[#allocation3 + $0x3f0] sm:$0xff]  ;;  %v2297_v36 = vld [vmem:[%s2286_s17 + $0x10] sm:$0xff]  ;;  %v312_v38 = vld [vmem:[#allocation3 + $0x8] sm:$0xff] }
  0x67   : > { %v378_v40 = vld [vmem:[%s2286_s17 + $0x28] sm:$0x1]  ;;  %v1581_v42 = vpack.c.bf16 %v442_v35, %v440_v33  ;;  %v452_v44 = vrot.slane %v2297_v36, 1  ;;  %v313_v48 = vld [vmem:[#allocation3 + $0x10] sm:$0xff]  ;;  %v316_v51 = vld [vmem:[#allocation3 + $0x28] sm:$0xff] }
  0x68   : > { %1542 = vmatpush1.bf16.msra.mxu0 %v1541_v37  ;;  %v375_v37 = vld [vmem:[%s2286_s17] sm:$0xfe]  ;;  %v377_v50 = vld [vmem:[%s2286_s17 + $0x20] sm:$0x1]  ;;  %v318_v52 = vld [vmem:[#allocation3 + $0x38] sm:$0xff] }
  0x69   : > { %1544 = vmatprep.subr.bf16.mxu0 %v1543_v39  ;;  %v314_v39 = vld [vmem:[#allocation3 + $0x18] sm:$0xff]  ;;  %v451_v43 = vrot.slane %v375_v37, 1  ;;  %v1587_v56 = vpack.c.bf16 %v318_v52, %v316_v51  ;;  %v315_v57 = vld [vmem:[#allocation3 + $0x20] sm:$0xff]  ;;  %v317_v58 = vld [vmem:[#allocation3 + $0x30] sm:$0xff] }
  0x6a   : > { %v1583_v45 = vpack.c.bf16 %v314_v39, %v312_v38  ;;  %v1589_v62 = vpack.c.bf16 %v317_v58, %v315_v57  ;;  %v319_v1 = vld [vmem:[#allocation3 + $0x40] sm:$0xff]  ;;  %v324_v4 = vld [vmem:[#allocation3 + $0x68] sm:$0xff]  ;;  %v326_v5 = vld [vmem:[#allocation3 + $0x78] sm:$0xff] }
  0x6b   : > { %v453_v53 = vsel %vm450_vm0, %v451_v43, %v452_v44  ;;  %v323_v6 = vld [vmem:[#allocation3 + $0x60] sm:$0xff]  ;;  %v325_v7 = vld [vmem:[#allocation3 + $0x70] sm:$0xff]  ;;  %v934_v13 = vld [vmem:[#allocation6 + $0x228] sm:$0xff] }
  0x6c   : > { %1546 = vmatpush1.bf16.msra.mxu0 %v1545_v47  ;;  %v311_v47 = vld [vmem:[#allocation3] sm:$0xff]  ;;  %v931_v12 = vld [vmem:[#allocation6 + $0x210] sm:$0xff]  ;;  %v330_v22 = vld [vmem:[#allocation3 + $0x98] sm:$0xff]  ;;  %v1597_v25 = vpack.c.bf16 %v325_v7, %v323_v6 }
  0x6d   : > { %1548 = vmatprep.subr.bf16.mxu0 %v1547_v49  ;;  %v459_v49 = vrot.slane %v378_v40, 1  ;;  %v933_v18 = vld [vmem:[#allocation6 + $0x220] sm:$0xff]  ;;  %v935_v19 = vld [vmem:[#allocation6 + $0x230] sm:$0xff]  ;;  %v940_v23 = vld [vmem:[#allocation6 + $0x258] sm:$0xff] }
  0x6e   : > { %v1717_v24 = vpack.c.bf16 %v935_v19, %v933_v18  ;;  %v937_v28 = vld [vmem:[#allocation6 + $0x240] sm:$0xff]  ;;  %v939_v29 = vld [vmem:[#allocation6 + $0x250] sm:$0xff]  ;;  %v944_v33 = vld [vmem:[#allocation6 + $0x278] sm:$0xff] }
  0x6f   : > { %v460_v59 = vsel %vm450_vm0, %v455_v46, %v459_v49  ;;  %v932_v46 = vld [vmem:[#allocation6 + $0x218] sm:$0xff]  ;;  %v329_v31 = vld [vmem:[#allocation3 + $0x90] sm:$0xff]  ;;  %v1721_v37 = vpack.c.bf16 %v939_v29, %v937_v28  ;;  %v331_v39 = vld [vmem:[#allocation3 + $0xa0] sm:$0xff] }
  0x70   : > { %1550 = vmatpush1.bf16.msra.mxu0 %v1549_v54  ;;  %v1585_v54 = vpack.c.bf16 %v313_v48, %v311_v47  ;;  %v334_v35 = vld [vmem:[#allocation3 + $0xb8] sm:$0xff]  ;;  %v943_v43 = vld [vmem:[#allocation6 + $0x270] sm:$0xff]  ;;  %v946_v47 = vld [vmem:[#allocation6 + $0x288] sm:$0xff] }
  0x71   : > { %1552 = vmatprep.subr.bf16.mxu0 %v1551_v55  ;;  %v457_v55 = vrot.slane %v377_v50, 1  ;;  %v948_v48 = vld [vmem:[#allocation6 + $0x298] sm:$0xff]  ;;  %v336_v49 = vld [vmem:[#allocation3 + $0xc8] sm:$0xff]  ;;  %v337_v58 = vld [vmem:[#allocation3 + $0xd0] sm:$0xff] }
  0x72   : > { %v338_v50 = vld [vmem:[#allocation3 + $0xd8] sm:$0xff]  ;;  %v341_v6 = vld [vmem:[#allocation3 + $0xf0] sm:$0xff]  ;;  %v954_v7 = vld [vmem:[#allocation6 + $0x2c8] sm:$0xff] }
  0x73   : > { %v458_v63 = vsel %vm450_vm0, %v452_v44, %v457_v55  ;;  %v945_v55 = vld [vmem:[#allocation6 + $0x280] sm:$0xff]  ;;  %v1607_v57 = vpack.c.bf16 %v338_v50, %v336_v49  ;;  %v958_v18 = vld [vmem:[#allocation6 + $0x2e8] sm:$0xff]  ;;  %v960_v19 = vld [vmem:[#allocation6 + $0x2f8] sm:$0xff] }
  0x74   : > { %1554 = vmatpush1.bf16.msra.mxu0 %v1553_v60  ;;  %v320_v60 = vld [vmem:[#allocation3 + $0x48] sm:$0xff]  ;;  %v349_v29 = vld [vmem:[#allocation3 + $0x130] sm:$0xff] }
  0x75   : > { %1556 = vmatprep.subr.bf16.mxu0 %v1555_v61  ;;  %v322_v61 = vld [vmem:[#allocation3 + $0x58] sm:$0xff] }
  0x76   : > { %v1591_v0 = vpack.c.bf16 %v322_v61, %v320_v60  ;;  %v952_v60 = vld [vmem:[#allocation6 + $0x2b8] sm:$0xff]  ;;  %v340_v61 = vld [vmem:[#allocation3 + $0xe8] sm:$0xff] }
  0x78   : > { %1558 = vmatpush1.bf16.msra.mxu0 %v1557_v2  ;;  %v321_v2 = vld [vmem:[#allocation3 + $0x50] sm:$0xff] }
  0x79   : > { %1560 = vmatprep.subr.bf16.mxu0 %v1559_v3  ;;  %v308_v3 = vld [vmem:[%s2286_s17 + $0x8] sm:$0xff]  ;;  %v1593_v10 = vpack.c.bf16 %v321_v2, %v319_v1  ;;  %v339_v1 = vld [vmem:[#allocation3 + $0xe0] sm:$0xff] }
  0x7c   : > { %1562 = vmatpush1.bf16.msra.mxu0 %v1561_v8  ;;  %v930_v8 = vld [vmem:[#allocation6 + $0x208] sm:$0xff] }
  0x7d   : > { %1564 = vmatprep.subr.bf16.mxu0 %v1563_v9  ;;  %v929_v9 = vld [vmem:[#allocation6 + $0x200] sm:$0xff]  ;;  %v1711_v11 = vpack.c.bf16 %v932_v46, %v930_v8  ;;  %v956_v8 = vld [vmem:[#allocation6 + $0x2d8] sm:$0xff]  ;;  %v344_v46 = vld [vmem:[#allocation3 + $0x108] sm:$0xff] }
  0x7e   : > { %v1713_v16 = vpack.c.bf16 %v931_v12, %v929_v9  ;;  %v346_v9 = vld [vmem:[#allocation3 + $0x118] sm:$0xff]  ;;  %v343_v12 = vld [vmem:[#allocation3 + $0x100] sm:$0xff] }
  0x7f   : > { %1712 = vmatprep.subr.bf16.mxu1 %v1711_v11  ;;  %v1613_v11 = vpack.c.bf16 %v341_v6, %v339_v1  ;;  %v366_v1 = vld [vmem:[#allocation3 + $0x1b8] sm:$0xff]  ;;  %v368_v6 = vld [vmem:[#allocation3 + $0x1c8] sm:$0xff] }
  0x80   : > { %1566 = vmatpush1.bf16.msra.mxu0 %v1565_v14  ;;  %v936_v14 = vld [vmem:[#allocation6 + $0x238] sm:$0xff]  ;;  %1714 = vmatpush1.bf16.msra.mxu1 %v1713_v16  ;;  %v1615_v16 = vpack.c.bf16 %v346_v9, %v344_v46  ;;  %v367_v9 = vld [vmem:[#allocation3 + $0x1c0] sm:$0xff] }
  0x81   : > { %1568 = vmatprep.subr.bf16.mxu0 %v1567_v15  ;;  %v1595_v15 = vpack.c.bf16 %v326_v5, %v324_v4  ;;  %v1715_v17 = vpack.c.bf16 %v936_v14, %v934_v13  ;;  %v951_v4 = vld [vmem:[#allocation6 + $0x2b0] sm:$0xff]  ;;  %v1735_v13 = vpack.c.bf16 %v956_v8, %v954_v7  ;;  %v953_v14 = vld [vmem:[#allocation6 + $0x2c0] sm:$0xff]  ;;  %v370_v7 = vld [vmem:[#allocation3 + $0x1d8] sm:$0xff] }
  0x82   : > { %v1639_v46 = vpack.c.bf16 %v370_v7, %v368_v6  ;;  %v652_v7 = vld [vmem:[#allocation3 + $0x4e0] sm:$0xff] }
  0x83   : > { %1716 = vmatprep.subr.bf16.mxu1 %v1715_v17  ;;  %v345_v17 = vld [vmem:[#allocation3 + $0x110] sm:$0xff] }
  0x84   : > { %1570 = vmatpush1.bf16.msra.mxu0 %v1569_v20  ;;  %v938_v20 = vld [vmem:[#allocation6 + $0x248] sm:$0xff]  ;;  %1718 = vmatpush1.bf16.msra.mxu1 %v1717_v24  ;;  %v347_v24 = vld [vmem:[#allocation3 + $0x120] sm:$0xff] }
  0x85   : > { %1572 = vmatprep.subr.bf16.mxu0 %v1571_v21  ;;  %v328_v21 = vld [vmem:[#allocation3 + $0x88] sm:$0xff] }
  0x86   : > { %v1599_v30 = vpack.c.bf16 %v330_v22, %v328_v21  ;;  %v350_v21 = vld [vmem:[#allocation3 + $0x138] sm:$0xff] }
  0x88   : > { %1574 = vmatpush1.bf16.msra.mxu0 %v1573_v26  ;;  %v327_v26 = vld [vmem:[#allocation3 + $0x80] sm:$0xff] }
  0x89   : > { %1576 = vmatprep.subr.bf16.mxu0 %v1575_v27  ;;  %v1719_v27 = vpack.c.bf16 %v940_v23, %v938_v20  ;;  %v1601_v38 = vpack.c.bf16 %v329_v31, %v327_v26  ;;  %v348_v20 = vld [vmem:[#allocation3 + $0x128] sm:$0xff]  ;;  %v1617_v23 = vpack.c.bf16 %v345_v17, %v343_v12  ;;  %v957_v26 = vld [vmem:[#allocation6 + $0x2e0] sm:$0xff]  ;;  %v964_v31 = vld [vmem:[#allocation6 + $0x318] sm:$0xff] }
  0x8a   : > { %v1619_v28 = vpack.c.bf16 %v350_v21, %v348_v20  ;;  %v374_v12 = vld [vmem:[#allocation3 + $0x1f8] sm:$0xff]  ;;  %v625_v17 = vld [vmem:[#allocation3 + $0x408] sm:$0xff]  ;;  %v624_v21 = vld [vmem:[#allocation3 + $0x400] sm:$0xff] }
  0x8b   : > { %1720 = vmatprep.subr.bf16.mxu1 %v1719_v27  ;;  %v959_v27 = vld [vmem:[#allocation6 + $0x2f0] sm:$0xff] }
  0x8c   : > { %1578 = vmatpush1.bf16.msra.mxu0 %v1577_v32  ;;  %v942_v32 = vld [vmem:[#allocation6 + $0x268] sm:$0xff]  ;;  %1722 = vmatpush1.bf16.msra.mxu1 %v1721_v37  ;;  %v351_v37 = vld [vmem:[#allocation3 + $0x140] sm:$0xff] }
  0x8d   : > { %1580 = vmatprep.subr.bf16.mxu0 %v1579_v34  ;;  %v332_v34 = vld [vmem:[#allocation3 + $0xa8] sm:$0xff]  ;;  %v1723_v40 = vpack.c.bf16 %v944_v33, %v942_v32  ;;  %v354_v33 = vld [vmem:[#allocation3 + $0x158] sm:$0xff] }
  0x8e   : > { %v1603_v44 = vpack.c.bf16 %v334_v35, %v332_v34  ;;  %v352_v32 = vld [vmem:[#allocation3 + $0x148] sm:$0xff]  ;;  %v1741_v34 = vpack.c.bf16 %v959_v27, %v957_v26  ;;  %v1621_v35 = vpack.c.bf16 %v349_v29, %v347_v24  ;;  %v631_v24 = vld [vmem:[#allocation3 + $0x438] sm:$0xff]  ;;  %v307_v26 = vld [vmem:[%s2286_s17] sm:$0xff] }
  0x8f   : > { %1724 = vmatprep.subr.bf16.mxu1 %v1723_v40  ;;  %v963_v40 = vld [vmem:[#allocation6 + $0x310] sm:$0xff]  ;;  %v628_v29 = vld [vmem:[#allocation3 + $0x420] sm:$0xff] }
  0x90   : > { %1582 = vmatpush1.bf16.msra.mxu0 %v1581_v42  ;;  %v941_v42 = vld [vmem:[#allocation6 + $0x260] sm:$0xff] }
  0x91   : > { %1584 = vmatprep.subr.bf16.mxu0 %v1583_v45  ;;  %v333_v45 = vld [vmem:[#allocation3 + $0xb0] sm:$0xff]  ;;  %v1725_v51 = vpack.c.bf16 %v943_v43, %v941_v42  ;;  %v1623_v42 = vpack.c.bf16 %v354_v33, %v352_v32  ;;  %v697_v32 = vrot.slane %v2289_v41, 2  ;;  %v633_v33 = vld [vmem:[#allocation3 + $0x448] sm:$0xff] }
  0x92   : > { %v1605_v52 = vpack.c.bf16 %v333_v45, %v331_v39  ;;  %v961_v39 = vld [vmem:[#allocation6 + $0x300] sm:$0xff]  ;;  %v353_v43 = vld [vmem:[#allocation3 + $0x150] sm:$0xff]  ;;  %v968_v45 = vld [vmem:[#allocation6 + $0x338] sm:$0xff] }
  0x93   : > { %530 = vmatmul.mubr.f32.vlgmr.msra.gmra.mrb[0].mxu0 %v453_v53  ;;  %v335_v53 = vld [vmem:[#allocation3 + $0xc0] sm:$0xff]  ;;  %1726 = vmatpush1.bf16.msra.mxu1 %v1725_v51  ;;  %v1745_v49 = vpack.c.bf16 %v963_v40, %v961_v39  ;;  %v1625_v50 = vpack.c.bf16 %v353_v43, %v351_v37  ;;  %v634_v39 = vld [vmem:[#allocation3 + $0x450] sm:$0xff]  ;;  %v639_v43 = vld [vmem:[#allocation3 + $0x478] sm:$0xff] }
  0x94   : > { %1586 = vmatpush1.bf16.msra.mxu0 %v1585_v54  ;;  %535 = vmatprep.mubr.f32.mxu0 %v460_v59  ;;  %v1727_v54 = vpack.c.bf16 %v948_v48, %v946_v47  ;;  %v950_v59 = vld [vmem:[#allocation6 + $0x2a8] sm:$0xff]  ;;  %v358_v48 = vld [vmem:[#allocation3 + $0x178] sm:$0xff] }
  0x95   : > { %1588 = vmatprep.subr.bf16.mxu0 %v1587_v56  ;;  %v947_v56 = vld [vmem:[#allocation6 + $0x290] sm:$0xff]  ;;  %v1731_v2 = vpack.c.bf16 %v952_v60, %v950_v59  ;;  %v356_v47 = vld [vmem:[#allocation3 + $0x168] sm:$0xff] }
  0x96   : > { %1728 = vmatprep.subr.bf16.mxu1 %v1727_v54  ;;  %v1627_v54 = vpack.c.bf16 %v358_v48, %v356_v47  ;;  %v636_v47 = vld [vmem:[#allocation3 + $0x460] sm:$0xff]  ;;  %v638_v48 = vld [vmem:[#allocation3 + $0x470] sm:$0xff] }
  0x97   : > { %536 = vmatmul.mubr.f32.gmra.mrb[2].mxu0 %v458_v63  ;;  %v1729_v63 = vpack.c.bf16 %v947_v56, %v945_v55  ;;  %v355_v55 = vld [vmem:[#allocation3 + $0x160] sm:$0xff]  ;;  %v357_v56 = vld [vmem:[#allocation3 + $0x170] sm:$0xff] }
  0x98   : > { %1590 = vmatpush1.bf16.msra.mxu0 %v1589_v62  ;;  %606 = vmatprep.mubr.f32.mxu0 %v308_v3  ;;  %v342_v62 = vld [vmem:[#allocation3 + $0xf8] sm:$0xff]  ;;  %v949_v3 = vld [vmem:[#allocation6 + $0x2a0] sm:$0xff]  ;;  %v1629_v60 = vpack.c.bf16 %v357_v56, %v355_v55  ;;  %v645_v55 = vld [vmem:[#allocation3 + $0x4a8] sm:$0xff] }
  0x99   : > { %1592 = vmatprep.subr.bf16.mxu0 %v1591_v0  ;;  %v1609_v0 = vpack.c.bf16 %v337_v58, %v335_v53  ;;  %v1611_v5 = vpack.c.bf16 %v342_v62, %v340_v61  ;;  %1730 = vmatpush1.bf16.msra.mxu1 %v1729_v63  ;;  %v967_v53 = vld [vmem:[#allocation6 + $0x330] sm:$0xff]  ;;  %v362_v58 = vld [vmem:[#allocation3 + $0x198] sm:$0xff]  ;;  %v359_v62 = vld [vmem:[#allocation3 + $0x180] sm:$0xff] }
  0x9a   : > { %1732 = vmatprep.subr.bf16.mxu1 %v1731_v2  ;;  %v361_v63 = vld [vmem:[#allocation3 + $0x190] sm:$0xff]  ;;  %v647_v56 = vld [vmem:[#allocation3 + $0x4b8] sm:$0xff] }
  0x9b   : > { %v1633_v2 = vpack.c.bf16 %v361_v63, %v359_v62  ;;  %v651_v62 = vld [vmem:[#allocation3 + $0x4d8] sm:$0xff] }
  0x9c   : > { %1594 = vmatpush1.bf16.msra.mxu0 %v1593_v10  ;;  %v1733_v10 = vpack.c.bf16 %v951_v4, %v949_v3  ;;  %v363_v4 = vld [vmem:[#allocation3 + $0x1a0] sm:$0xff] }
  0x9d   : > { %1596 = vmatprep.subr.bf16.mxu0 %v1595_v15  ;;  %v955_v15 = vld [vmem:[#allocation6 + $0x2d0] sm:$0xff] }
  0x9e   : > { %1734 = vmatpush1.bf16.msra.mxu1 %v1733_v10  ;;  %v1737_v22 = vpack.c.bf16 %v955_v15, %v953_v14  ;;  %v369_v10 = vld [vmem:[#allocation3 + $0x1d0] sm:$0xff]  ;;  %v371_v15 = vld [vmem:[#allocation3 + $0x1e0] sm:$0xff] }
  0x9f   : > { %1736 = vmatprep.subr.bf16.mxu1 %v1735_v13  ;;  %v1641_v13 = vpack.c.bf16 %v369_v10, %v367_v9  ;;  %v659_v9 = vld [vmem:[#allocation3 + $0x518] sm:$0xff] }
  0xa0   : > { %1598 = vmatpush1.bf16.msra.mxu0 %v1597_v25  ;;  %v1739_v25 = vpack.c.bf16 %v960_v19, %v958_v18  ;;  %v627_v18 = vld [vmem:[#allocation3 + $0x418] sm:$0xff] }
  0xa1   : > { %1600 = vmatprep.subr.bf16.mxu0 %v1599_v30  ;;  %v962_v30 = vld [vmem:[#allocation6 + $0x308] sm:$0xff]  ;;  %v1647_v20 = vpack.c.bf16 %v627_v18, %v625_v17  ;;  %v660_v18 = vld [vmem:[#allocation3 + $0x520] sm:$0xff] }
  0xa2   : > { %1738 = vmatpush1.bf16.msra.mxu1 %v1737_v22  ;;  %v626_v22 = vld [vmem:[#allocation3 + $0x410] sm:$0xff] }
  0xa3   : > { %1740 = vmatprep.subr.bf16.mxu1 %v1739_v25  ;;  %v620_v25 = vld [vmem:[%s2286_s17 + $0x8] sm:$0xfc]  ;;  %v1649_v27 = vpack.c.bf16 %v626_v22, %v624_v21 }
  0xa4   : > { %1602 = vmatpush1.bf16.msra.mxu0 %v1601_v38  ;;  %v1743_v38 = vpack.c.bf16 %v964_v31, %v962_v30  ;;  %v630_v30 = vld [vmem:[#allocation3 + $0x430] sm:$0xff]  ;;  %v696_v31 = vrot.slane %v620_v25, 2  ;;  %v667_v21 = vld [vmem:[#allocation3 + $0x558] sm:$0xff] }
  0xa5   : > { %1604 = vmatprep.subr.bf16.mxu0 %v1603_v44  ;;  %v966_v44 = vld [vmem:[#allocation6 + $0x328] sm:$0xff]  ;;  %v666_v25 = vld [vmem:[#allocation3 + $0x550] sm:$0xff] }
  0xa6   : > { %1742 = vmatpush1.bf16.msra.mxu1 %v1741_v34  ;;  %v1747_v51 = vpack.c.bf16 %v968_v45, %v966_v44  ;;  %v635_v34 = vld [vmem:[#allocation3 + $0x458] sm:$0xff]  ;;  %v698_v40 = vsel %vm692_vm1, %v696_v31, %v697_v32  ;;  %v670_v31 = vld [vmem:[#allocation3 + $0x570] sm:$0xff] }
  0xa7   : > { %1744 = vmatprep.subr.bf16.mxu1 %v1743_v38  ;;  %v1655_v37 = vpack.c.bf16 %v635_v34, %v633_v33  ;;  %v632_v38 = vld [vmem:[#allocation3 + $0x440] sm:$0xff]  ;;  %v673_v33 = vld [vmem:[#allocation3 + $0x588] sm:$0xff]  ;;  %v675_v34 = vld [vmem:[#allocation3 + $0x598] sm:$0xff] }
  0xa8   : > { %1606 = vmatpush1.bf16.msra.mxu0 %v1605_v52  ;;  %v965_v52 = vld [vmem:[#allocation6 + $0x320] sm:$0xff]  ;;  %v1657_v44 = vpack.c.bf16 %v634_v39, %v632_v38  ;;  %v674_v39 = vld [vmem:[#allocation3 + $0x590] sm:$0xff] }
  0xa9   : > { %1608 = vmatprep.subr.bf16.mxu0 %v1607_v57  ;;  %v360_v57 = vld [vmem:[#allocation3 + $0x188] sm:$0xff]  ;;  %v1749_v59 = vpack.c.bf16 %v967_v53, %v965_v52  ;;  %v640_v53 = vld [vmem:[#allocation3 + $0x480] sm:$0xff] }
  0xaa   : > { %1746 = vmatpush1.bf16.msra.mxu1 %v1745_v49  ;;  %v1631_v61 = vpack.c.bf16 %v362_v58, %v360_v57  ;;  %v641_v49 = vld [vmem:[#allocation3 + $0x488] sm:$0xff]  ;;  %v1667_v58 = vpack.c.bf16 %v647_v56, %v645_v55  ;;  %v672_v38 = vld [vmem:[#allocation3 + $0x580] sm:$0xff]  ;;  %v687_v55 = vld [vmem:[#allocation3 + $0x5f8] sm:$0xff] }
  0xab   : > { %1748 = vmatprep.subr.bf16.mxu1 %v1747_v51  ;;  %v1661_v51 = vpack.c.bf16 %v638_v48, %v636_v47  ;;  %v678_v47 = vld [vmem:[#allocation3 + $0x5b0] sm:$0xff]  ;;  %v681_v48 = vld [vmem:[#allocation3 + $0x5c8] sm:$0xff] }
  0xac   : > { %1610 = vmatpush1.bf16.msra.mxu0 %v1609_v0  ;;  %v364_v0 = vld [vmem:[#allocation3 + $0x1a8] sm:$0xff] }
  0xad   : > { %1612 = vmatprep.subr.bf16.mxu0 %v1611_v5  ;;  %v1635_v3 = vpack.c.bf16 %v366_v1, %v364_v0  ;;  %v365_v5 = vld [vmem:[#allocation3 + $0x1b0] sm:$0xff]  ;;  %v648_v1 = vld [vmem:[#allocation3 + $0x4c0] sm:$0xff] }
  0xae   : > { %1750 = vmatpush1.bf16.msra.mxu1 %v1749_v59  ;;  %v1637_v8 = vpack.c.bf16 %v365_v5, %v363_v4  ;;  %v644_v59 = vld [vmem:[#allocation3 + $0x4a0] sm:$0xff]  ;;  %v655_v4 = vld [vmem:[#allocation3 + $0x4f8] sm:$0xff] }
  0xb0   : > { %1614 = vmatpush1.bf16.msra.mxu0 %v1613_v11  ;;  %v372_v11 = vld [vmem:[#allocation3 + $0x1e8] sm:$0xff] }
  0xb1   : > { %1616 = vmatprep.subr.bf16.mxu0 %v1615_v16  ;;  %v1643_v14 = vpack.c.bf16 %v374_v12, %v372_v11  ;;  %v373_v16 = vld [vmem:[#allocation3 + $0x1f0] sm:$0xff]  ;;  %v656_v12 = vld [vmem:[#allocation3 + $0x500] sm:$0xff] }
  0xb2   : > { %v1645_v19 = vpack.c.bf16 %v373_v16, %v371_v15  ;;  %v663_v15 = vld [vmem:[#allocation3 + $0x538] sm:$0xff] }
  0xb4   : > { %1618 = vmatpush1.bf16.msra.mxu0 %v1617_v23  ;;  %v629_v23 = vld [vmem:[#allocation3 + $0x428] sm:$0xff] }
  0xb5   : > { %1620 = vmatprep.subr.bf16.mxu0 %v1619_v28  ;;  %v1651_v28 = vpack.c.bf16 %v631_v24, %v629_v23  ;;  %v664_v24 = vld [vmem:[#allocation3 + $0x540] sm:$0xff] }
  0xb8   : > { %1622 = vmatpush1.bf16.msra.mxu0 %v1621_v35  ;;  %v1653_v35 = vpack.c.bf16 %v630_v30, %v628_v29  ;;  %v668_v30 = vld [vmem:[#allocation3 + $0x560] sm:$0xff] }
  0xb9   : > { %1624 = vmatprep.subr.bf16.mxu0 %v1623_v42  ;;  %v637_v42 = vld [vmem:[#allocation3 + $0x468] sm:$0xff] }
  0xba   : > { %v1659_v45 = vpack.c.bf16 %v639_v43, %v637_v42  ;;  %v679_v42 = vld [vmem:[#allocation3 + $0x5b8] sm:$0xff]  ;;  %v1697_v43 = vpack.c.bf16 %v674_v39, %v672_v38 }
  0xbb   : > { %v992_v38 = vld [vmem:[#allocation6 + $0x3f8] sm:$0xff] }
  0xbc   : > { %1626 = vmatpush1.bf16.msra.mxu0 %v1625_v50  ;;  %v643_v50 = vld [vmem:[#allocation3 + $0x498] sm:$0xff] }
  0xbd   : > { %1628 = vmatprep.subr.bf16.mxu0 %v1627_v54  ;;  %v1663_v52 = vpack.c.bf16 %v643_v50, %v641_v49  ;;  %v642_v54 = vld [vmem:[#allocation3 + $0x490] sm:$0xff]  ;;  %v683_v49 = vld [vmem:[#allocation3 + $0x5d8] sm:$0xff] }
  0xbe   : > { %v1665_v57 = vpack.c.bf16 %v642_v54, %v640_v53  ;;  %v682_v53 = vld [vmem:[#allocation3 + $0x5d0] sm:$0xff]  ;;  %v685_v54 = vld [vmem:[#allocation3 + $0x5e8] sm:$0xff] }
  0xc0   : > { %1630 = vmatpush1.bf16.msra.mxu0 %v1629_v60  ;;  %v646_v60 = vld [vmem:[#allocation3 + $0x4b0] sm:$0xff] }
  0xc1   : > { %1632 = vmatprep.subr.bf16.mxu0 %v1631_v61  ;;  %v649_v61 = vld [vmem:[#allocation3 + $0x4c8] sm:$0xff]  ;;  %v1669_v63 = vpack.c.bf16 %v646_v60, %v644_v59  ;;  %v686_v59 = vld [vmem:[#allocation3 + $0x5f0] sm:$0xff] }
  0xc2   : > { %v1671_v0 = vpack.c.bf16 %v651_v62, %v649_v61  ;;  %v619_v60 = vld [vmem:[%s2286_s17] sm:$0xfc]  ;;  %v622_v61 = vld [vmem:[%s2286_s17 + $0x28] sm:$0x3] }
  0xc4   : > { %1634 = vmatpush1.bf16.msra.mxu0 %v1633_v2  ;;  %v650_v2 = vld [vmem:[#allocation3 + $0x4d0] sm:$0xff] }
  0xc5   : > { %1636 = vmatprep.subr.bf16.mxu0 %v1635_v3  ;;  %v653_v3 = vld [vmem:[#allocation3 + $0x4e8] sm:$0xff]  ;;  %v1673_v5 = vpack.c.bf16 %v650_v2, %v648_v1  ;;  %v701_v1 = vrot.slane %v622_v61, 2  ;;  %v621_v2 = vld [vmem:[%s2286_s17 + $0x20] sm:$0x3] }
  0xc6   : > { %v1675_v6 = vpack.c.bf16 %v655_v4, %v653_v3  ;;  %v699_v4 = vrot.slane %v621_v2, 2 }
  0xc8   : > { %1638 = vmatpush1.bf16.msra.mxu0 %v1637_v8  ;;  %v654_v8 = vld [vmem:[#allocation3 + $0x4f0] sm:$0xff] }
  0xc9   : > { %1640 = vmatprep.subr.bf16.mxu0 %v1639_v46  ;;  %v657_v46 = vld [vmem:[#allocation3 + $0x508] sm:$0xff]  ;;  %v1677_v10 = vpack.c.bf16 %v654_v8, %v652_v7  ;;  %v972_v8 = vld [vmem:[#allocation6 + $0x358] sm:$0xff] }
  0xca   : > { %v1679_v11 = vpack.c.bf16 %v659_v9, %v657_v46  ;;  %v970_v7 = vld [vmem:[#allocation6 + $0x348] sm:$0xff]  ;;  %v971_v9 = vld [vmem:[#allocation6 + $0x350] sm:$0xff] }
  0xcb   : > { %v1751_v46 = vpack.c.bf16 %v972_v8, %v970_v7 }
  0xcc   : > { %1642 = vmatpush1.bf16.msra.mxu0 %v1641_v13  ;;  %v658_v13 = vld [vmem:[#allocation3 + $0x510] sm:$0xff] }
  0xcd   : > { %1644 = vmatprep.subr.bf16.mxu0 %v1643_v14  ;;  %v661_v14 = vld [vmem:[#allocation3 + $0x528] sm:$0xff]  ;;  %v1681_v16 = vpack.c.bf16 %v658_v13, %v656_v12  ;;  %1752 = vmatprep.subr.bf16.mxu1 %v1751_v46  ;;  %v976_v12 = vld [vmem:[#allocation6 + $0x378] sm:$0xff] }
  0xce   : > { %v1683_v17 = vpack.c.bf16 %v663_v15, %v661_v14  ;;  %v973_v14 = vld [vmem:[#allocation6 + $0x360] sm:$0xff] }
  0xd0   : > { %1646 = vmatpush1.bf16.msra.mxu0 %v1645_v19  ;;  %v662_v19 = vld [vmem:[#allocation3 + $0x530] sm:$0xff] }
  0xd1   : > { %1648 = vmatprep.subr.bf16.mxu0 %v1647_v20  ;;  %v665_v20 = vld [vmem:[#allocation3 + $0x548] sm:$0xff]  ;;  %v1685_v22 = vpack.c.bf16 %v662_v19, %v660_v18  ;;  %v977_v19 = vld [vmem:[#allocation6 + $0x380] sm:$0xff] }
  0xd2   : > { %v1687_v23 = vpack.c.bf16 %v667_v21, %v665_v20  ;;  %v979_v20 = vld [vmem:[#allocation6 + $0x390] sm:$0xff] }
  0xd3   : > { %607 = vmatmul.mubr.f32.vlgmr.msra.gmra.mrb[0].mxu0 %v307_v26  ;;  %v669_v26 = vld [vmem:[#allocation3 + $0x568] sm:$0xff]  ;;  %v1761_v21 = vpack.c.bf16 %v979_v20, %v977_v19 }
  0xd4   : > { %1650 = vmatpush1.bf16.msra.mxu0 %v1649_v27  ;;  %612 = vmatprep.mubr.f32.mxu0 %v2289_v41  ;;  %v671_v27 = vld [vmem:[#allocation3 + $0x578] sm:$0xff]  ;;  %v975_v41 = vld [vmem:[#allocation6 + $0x370] sm:$0xff] }
  0xd5   : > { %1652 = vmatprep.subr.bf16.mxu0 %v1651_v28  ;;  %v1689_v28 = vpack.c.bf16 %v666_v25, %v664_v24  ;;  %v1691_v29 = vpack.c.bf16 %v671_v27, %v669_v26  ;;  %v1757_v15 = vpack.c.bf16 %v975_v41, %v973_v14  ;;  %v984_v24 = vld [vmem:[#allocation6 + $0x3b8] sm:$0xff]  ;;  %v981_v26 = vld [vmem:[#allocation6 + $0x3a0] sm:$0xff]  ;;  %v983_v27 = vld [vmem:[#allocation6 + $0x3b0] sm:$0xff] }
  0xd6   : > { %v860_v14 = vld [vmem:[#allocation6] sm:$0xff]  ;;  %v862_v41 = vld [vmem:[#allocation6 + $0x10] sm:$0xff] }
  0xd7   : > { %613 = vmatmul.mubr.f32.gmra.mrb[2].mxu0 %v2297_v36 }
  0xd8   : > { %1654 = vmatpush1.bf16.msra.mxu0 %v1653_v35  ;;  %771 = vmatprep.mubr.f32.mxu0 %v698_v40  ;;  %v1693_v35 = vpack.c.bf16 %v670_v31, %v668_v30  ;;  %v677_v40 = vld [vmem:[#allocation3 + $0x5a8] sm:$0xff]  ;;  %v988_v30 = vld [vmem:[#allocation6 + $0x3d8] sm:$0xff] }
  0xd9   : > { %1656 = vmatprep.subr.bf16.mxu0 %v1655_v37  ;;  %v1695_v37 = vpack.c.bf16 %v675_v34, %v673_v33  ;;  %v985_v33 = vld [vmem:[#allocation6 + $0x3c0] sm:$0xff]  ;;  %v987_v34 = vld [vmem:[#allocation6 + $0x3d0] sm:$0xff] }
  0xdc   : > { %1658 = vmatpush1.bf16.msra.mxu0 %v1657_v44  ;;  %v1699_v44 = vpack.c.bf16 %v679_v42, %v677_v40  ;;  %v989_v40 = vld [vmem:[#allocation6 + $0x3e0] sm:$0xff]  ;;  %v991_v42 = vld [vmem:[#allocation6 + $0x3f0] sm:$0xff] }
  0xdd   : > { %1660 = vmatprep.subr.bf16.mxu0 %v1659_v45  ;;  %v676_v45 = vld [vmem:[#allocation3 + $0x5a0] sm:$0xff] }
  0xde   : > { %v1701_v50 = vpack.c.bf16 %v678_v47, %v676_v45  ;;  %v863_v45 = vld [vmem:[#allocation6 + $0x18] sm:$0xff] }
  0xe0   : > { %1662 = vmatpush1.bf16.msra.mxu0 %v1661_v51  ;;  %v1703_v51 = vpack.c.bf16 %v683_v49, %v681_v48 }
  0xe1   : > { %1664 = vmatprep.subr.bf16.mxu0 %v1663_v52  ;;  %v680_v52 = vld [vmem:[#allocation3 + $0x5c0] sm:$0xff] }
  0xe2   : > { %v1705_v56 = vpack.c.bf16 %v682_v53, %v680_v52  ;;  %v804_v52 = vld [vmem:[%s2440_s4] sm:$0x3] }
  0xe4   : > { %1666 = vmatpush1.bf16.msra.mxu0 %v1665_v57  ;;  %v1707_v57 = vpack.c.bf16 %v687_v55, %v685_v54 }
  0xe5   : > { %1668 = vmatprep.subr.bf16.mxu0 %v1667_v58  ;;  %v684_v58 = vld [vmem:[#allocation3 + $0x5e0] sm:$0xff] }
  0xe6   : > { %v1709_v62 = vpack.c.bf16 %v686_v59, %v684_v58 }
  0xe8   : > { %1670 = vmatpush1.bf16.msra.mxu0 %v1669_v63  ;;  %v693_v63 = vrot.slane %v619_v60, 2 }
  0xe9   : > { %1672 = vmatprep.subr.bf16.mxu0 %v1671_v0  ;;  %v694_v0 = vrot.slane %v2297_v36, 2  ;;  %v969_v36 = vld [vmem:[#allocation6 + $0x340] sm:$0xff] }
  0xeb   : > { %v695_v3 = vsel %vm692_vm1, %v693_v63, %v694_v0 }
  0xec   : > { %1674 = vmatpush1.bf16.msra.mxu0 %v1673_v5  ;;  %v702_v5 = vsel %vm692_vm1, %v697_v32, %v701_v1  ;;  %v978_v32 = vld [vmem:[#allocation6 + $0x388] sm:$0xff] }
  0xed   : > { %1676 = vmatprep.subr.bf16.mxu0 %v1675_v6  ;;  %v700_v6 = vsel %vm692_vm1, %v694_v0, %v699_v4 }
  0xf0   : > { %1678 = vmatpush1.bf16.msra.mxu0 %v1677_v10  ;;  %v1753_v10 = vpack.c.bf16 %v971_v9, %v969_v36 }
  0xf1   : > { %1680 = vmatprep.subr.bf16.mxu0 %v1679_v11  ;;  %v974_v11 = vld [vmem:[#allocation6 + $0x368] sm:$0xff] }
  0xf2   : > { %1754 = vmatpush1.bf16.msra.mxu1 %v1753_v10  ;;  %v1755_v13 = vpack.c.bf16 %v976_v12, %v974_v11 }
  0xf4   : > { %1682 = vmatpush1.bf16.msra.mxu0 %v1681_v16  ;;  %1756 = vmatprep.subr.bf16.mxu1 %v1755_v13  ;;  %v980_v16 = vld [vmem:[#allocation6 + $0x398] sm:$0xff] }
  0xf5   : > { %1684 = vmatprep.subr.bf16.mxu0 %v1683_v17  ;;  %v790_v17 = vlaneseq  ;;  %v1759_v18 = vpack.c.bf16 %v980_v16, %v978_v32  ;;  %v865_v16 = vld [vmem:[#allocation6 + $0x28] sm:$0xff] }
  0xf6   : > { %1758 = vmatpush1.bf16.msra.mxu1 %v1757_v15 }
  0xf7   : > { %vm826_vm2 = vcmp.lt.s32.totalorder %v790_v17, 256  ;;  %1760 = vmatprep.subr.bf16.mxu1 %v1759_v18  ;;  %v791_v48 = vshrl.u32 %v790_v17, 7  ;;  %v867_v17 = vld [vmem:[#allocation6 + $0x38] sm:$0xff] }
  0xf8   : > { %1686 = vmatpush1.bf16.msra.mxu0 %v1685_v22  ;;  %v2117_v22 = vmov 0.0  }
  0xf9   : > { %1688 = vmatprep.subr.bf16.mxu0 %v1687_v23  ;;  %828 = vst.msk [vmem:[#allocation2] ss:$8 sm:$0x3] %vm826_vm2, %v2117_v22  ;;  %831 = vst.msk [vmem:[#allocation2 + $0x21] ss:$8 sm:$0x3] %vm826_vm2, %v2117_v22 }
  0xfa   : > { %1762 = vmatpush1.bf16.msra.mxu1 %v1761_v21  ;;  %v982_v23 = vld [vmem:[#allocation6 + $0x3a8] sm:$0xff]  ;;  %v2326_v49 = vsub.s32 0, %v791_v48  ;;  %v1777_v21 = vpack.c.bf16 %v862_v41, %v860_v14 }
  0xfb   : > { %v1763_v25 = vpack.c.bf16 %v984_v24, %v982_v23  ;;  %v1779_v23 = vpack.c.bf16 %v867_v17, %v865_v16  ;;  %v897_v16 = vld [vmem:[#allocation6 + $0x128] sm:$0xff]  ;;  %v899_v17 = vld [vmem:[#allocation6 + $0x138] sm:$0xff] }
  0xfc   : > { %1690 = vmatpush1.bf16.msra.mxu0 %v1689_v28  ;;  %v1765_v28 = vpack.c.bf16 %v983_v27, %v981_v26  ;;  %v809_v55 = vrot.slane %v804_v52, %v2326_v49  ;;  %v866_v26 = vld [vmem:[#allocation6 + $0x30] sm:$0xff] }
  0xfd   : > { %1692 = vmatprep.subr.bf16.mxu0 %v1691_v29  ;;  %1764 = vmatprep.subr.bf16.mxu1 %v1763_v25  ;;  %v986_v29 = vld [vmem:[#allocation6 + $0x3c8] sm:$0xff]  ;;  %v864_v25 = vld [vmem:[#allocation6 + $0x20] sm:$0xff] }
  0xfe   : > { %1766 = vmatpush1.bf16.msra.mxu1 %v1765_v28  ;;  %v1767_v31 = vpack.c.bf16 %v988_v30, %v986_v29  ;;  %v869_v30 = vld [vmem:[#allocation6 + $0x48] sm:$0xff] }
 0x100   : > { %1694 = vmatpush1.bf16.msra.mxu0 %v1693_v35  ;;  %v1769_v35 = vpack.c.bf16 %v987_v34, %v985_v33  ;;  %1768 = vmatprep.subr.bf16.mxu1 %v1767_v31  ;;  %v871_v31 = vld [vmem:[#allocation6 + $0x58] sm:$0xff]  ;;  %v1781_v34 = vpack.c.bf16 %v866_v26, %v864_v25  ;;  %v900_v26 = vld [vmem:[#allocation6 + $0x140] sm:$0xff] }
 0x101   : > { %1696 = vmatprep.subr.bf16.mxu0 %v1695_v37  ;;  %v990_v37 = vld [vmem:[#allocation6 + $0x3e8] sm:$0xff] }
 0x102   : > { %1770 = vmatpush1.bf16.msra.mxu1 %v1769_v35  ;;  %v1771_v39 = vpack.c.bf16 %v992_v38, %v990_v37  ;;  %v1783_v37 = vpack.c.bf16 %v871_v31, %v869_v30  ;;  %v868_v38 = vld [vmem:[#allocation6 + $0x40] sm:$0xff] }
 0x104   : > { %1698 = vmatpush1.bf16.msra.mxu0 %v1697_v43  ;;  %v1773_v43 = vpack.c.bf16 %v991_v42, %v989_v40  ;;  %1772 = vmatprep.subr.bf16.mxu1 %v1771_v39  ;;  %v870_v39 = vld [vmem:[#allocation6 + $0x50] sm:$0xff]  ;;  %v873_v42 = vld [vmem:[#allocation6 + $0x68] sm:$0xff] }
 0x105   : > { %1700 = vmatprep.subr.bf16.mxu0 %v1699_v44  ;;  %v861_v44 = vld [vmem:[#allocation6 + $0x8] sm:$0xff] }
 0x106   : > { %1774 = vmatpush1.bf16.msra.mxu1 %v1773_v43  ;;  %v1775_v47 = vpack.c.bf16 %v863_v45, %v861_v44  ;;  %v875_v43 = vld [vmem:[#allocation6 + $0x78] sm:$0xff]  ;;  %v1785_v45 = vpack.c.bf16 %v870_v39, %v868_v38 }
 0x108   : > { %1702 = vmatpush1.bf16.msra.mxu0 %v1701_v50  ;;  %1776 = vmatprep.subr.bf16.mxu1 %v1775_v47  ;;  %v788_v50 = vld [vmem:[%s2439_s3] sm:$0x3]  ;;  %v1787_v47 = vpack.c.bf16 %v875_v43, %v873_v42  ;;  %v913_v43 = vld [vmem:[#allocation6 + $0x1a8] sm:$0xff] }
 0x109   : > { %1704 = vmatprep.subr.bf16.mxu0 %v1703_v51  ;;  %v2331_v51 = vsub.s32 1, %v791_v48  ;;  %v793_v53 = vrot.slane %v788_v50, %v2326_v49  ;;  %v872_v48 = vld [vmem:[#allocation6 + $0x60] sm:$0xff]  ;;  %v910_v42 = vld [vmem:[#allocation6 + $0x190] sm:$0xff] }
 0x10b   : > { %v797_v54 = vrot.slane %v788_v50, %v2331_v51  ;;  %v874_v50 = vld [vmem:[#allocation6 + $0x70] sm:$0xff] }
 0x10c   : > { %1706 = vmatpush1.bf16.msra.mxu0 %v1705_v56 }
 0x10d   : > { %1708 = vmatprep.subr.bf16.mxu0 %v1707_v57  ;;  %v813_v57 = vrot.slane %v804_v52, %v2331_v51  ;;  %v877_v52 = vld [vmem:[#allocation6 + $0x88] sm:$0xff] }
 0x110   : > { %1710 = vmatpush1.bf16.msra.mxu0 %v1709_v62 }
 0x113   : > { %772 = vmatmul.mubr.f32.vlgmr.msra.gmra.mrb[0].mxu0 %v695_v3 }
 0x114   : > { %777 = vmatprep.mubr.f32.mxu0 %v702_v5 }
 0x117   : > { %778 = vmatmul.mubr.f32.gmra.mrb[2].mxu0 %v700_v6 }
 0x1e6   : > { %v773_v56 = vpop.f32.mrb[0].mxu0 }
 0x1e7   : > { %v800_v58 = vmul.f32 %v793_v53, %v773_v56  ;;  %v775_v59 = vpop.f32.mrb[1].mxu0  ;;  %v876_v56 = vld [vmem:[#allocation6 + $0x80] sm:$0xff] }
 0x1e8   : > { %v801_v60 = vmul.f32 %v797_v54, %v775_v59  ;;  %v883_v59 = vld [vmem:[#allocation6 + $0xb8] sm:$0xff] }
 0x1e9   : > { %v816_v61 = vadd.f32 %v809_v55, %v800_v58  ;;  %v881_v58 = vld [vmem:[#allocation6 + $0xa8] sm:$0xff] }
 0x1ea   : > { %v817_v62 = vadd.f32 %v813_v57, %v801_v60  ;;  %v779_v63 = vpop.f32.mrb[2].mxu0 }
 0x1eb   : > { %v820_v0 = vmax.f32 %v816_v61, 0.0  ;;  %v802_v1 = vmul.f32 %v793_v53, %v779_v63  ;;  %v781_v2 = vpop.f32.mrb[3].mxu0  ;;  %v879_v53 = vld [vmem:[#allocation6 + $0x98] sm:$0xff]  ;;  %v1795_v61 = vpack.c.bf16 %v883_v59, %v881_v58  ;;  %v882_v63 = vld [vmem:[#allocation6 + $0xb0] sm:$0xff]  ;;  %v921_v58 = vld [vmem:[#allocation6 + $0x1e8] sm:$0xff] }
 0x1ec   : > { %v821_v3 = vmax.f32 %v817_v62, 0.0  ;;  %v803_v4 = vmul.f32 %v797_v54, %v781_v2  ;;  %v1789_v54 = vpack.c.bf16 %v874_v50, %v872_v48  ;;  %v880_v62 = vld [vmem:[#allocation6 + $0xa0] sm:$0xff]  ;;  %v914_v50 = vld [vmem:[#allocation6 + $0x1b0] sm:$0xff]  ;;  %v923_v59 = vld [vmem:[#allocation6 + $0x1f8] sm:$0xff] }
 0x1ed   : > { %v838_v5 = vrot.slane %v820_v0, 7  ;;  %v818_v6 = vadd.f32 %v809_v55, %v802_v1  ;;  %v1791_v55 = vpack.c.bf16 %v879_v53, %v877_v52  ;;  %v885_v0 = vld [vmem:[#allocation6 + $0xc8] sm:$0xff]  ;;  %v887_v1 = vld [vmem:[#allocation6 + $0xd8] sm:$0xff]  ;;  %v1797_v2 = vpack.c.bf16 %v882_v63, %v880_v62  ;;  %v912_v48 = vld [vmem:[#allocation6 + $0x1a0] sm:$0xff] }
 0x1ee   : > { %v839_v7 = vrot.slane %v821_v3, 7  ;;  %v819_v8 = vadd.f32 %v813_v57, %v803_v4  ;;  %v878_v57 = vld [vmem:[#allocation6 + $0x90] sm:$0xff]  ;;  %v1799_v3 = vpack.c.bf16 %v887_v1, %v885_v0  ;;  %v884_v4 = vld [vmem:[#allocation6 + $0xc0] sm:$0xff]  ;;  %v917_v52 = vld [vmem:[#allocation6 + $0x1c8] sm:$0xff] }
 0x1ef   : > { %850 = vst [vmem:[#allocation2] sm:$0xfe] %v838_v5  ;;  %v822_v46 = vmax.f32 %v818_v6, 0.0  ;;  %v1793_v60 = vpack.c.bf16 %v878_v57, %v876_v56  ;;  %v889_v6 = vld [vmem:[#allocation6 + $0xe8] sm:$0xff]  ;;  %v919_v53 = vld [vmem:[#allocation6 + $0x1d8] sm:$0xff]  ;;  %v916_v56 = vld [vmem:[#allocation6 + $0x1c0] sm:$0xff] }
 0x1f0   : > { %851 = vst [vmem:[#allocation2 + $0x8] sm:$0xfe] %v839_v7  ;;  %v823_v36 = vmax.f32 %v819_v8, 0.0  ;;  %v918_v57 = vld [vmem:[#allocation6 + $0x1d0] sm:$0xff]  ;;  %v920_v62 = vld [vmem:[#allocation6 + $0x1e0] sm:$0xff]  ;;  %v1173_v0 = vld [vmem:[#allocation6 + $0x408] sm:$0xff] }
 0x1f1   : > { %v840_v9 = vrot.slane %v822_v46, 7  ;;  %v922_v63 = vld [vmem:[#allocation6 + $0x1f0] sm:$0xff]  ;;  %v1175_v1 = vld [vmem:[#allocation6 + $0x418] sm:$0xff] }
 0x1f2   : > { %v842_v10 = vrot.slane %v823_v36, 7  ;;  %v888_v36 = vld [vmem:[#allocation6 + $0xe0] sm:$0xff] }
 0x1f3   : > { %v2340_v11 = vsel %vm837_vm3, %v838_v5, %v840_v9  ;;  %854 = vst [vmem:[#allocation2 + $0x20] sm:$0x1] %v840_v9  ;;  %v886_v5 = vld [vmem:[#allocation6 + $0xd0] sm:$0xff] }
 0x1f4   : > { %v2342_v12 = vsel %vm837_vm3, %v839_v7, %v842_v10  ;;  %855 = vst [vmem:[#allocation2 + $0x28] sm:$0x1] %v842_v10  ;;  %v1000_v20 = vrot.slane %v2340_v11, 1  ;;  %v891_v7 = vld [vmem:[#allocation6 + $0xf8] sm:$0xff]  ;;  %v1801_v8 = vpack.c.bf16 %v886_v5, %v884_v4  ;;  %v890_v9 = vld [vmem:[#allocation6 + $0xf0] sm:$0xff]  ;;  %v893_v10 = vld [vmem:[#allocation6 + $0x108] sm:$0xff] }
 0x1f5   : > { %v1003_v19 = vrot.slane %v2342_v12, 1  ;;  %v1803_v46 = vpack.c.bf16 %v891_v7, %v889_v6  ;;  %v1805_v14 = vpack.c.bf16 %v890_v9, %v888_v36  ;;  %v1172_v4 = vld [vmem:[#allocation6 + $0x400] sm:$0xff]  ;;  %v1174_v5 = vld [vmem:[#allocation6 + $0x410] sm:$0xff]  ;;  %v1177_v6 = vld [vmem:[#allocation6 + $0x428] sm:$0xff] }
 0x1f6   : > { %v924_v13 = vld [vmem:[#allocation2] sm:$0xfe]  ;;  %v1179_v7 = vld [vmem:[#allocation6 + $0x438] sm:$0xff]  ;;  %v1176_v9 = vld [vmem:[#allocation6 + $0x420] sm:$0xff] }
 0x1f7   : > { %v925_v15 = vld [vmem:[#allocation2 + $0x8] sm:$0xfe]  ;;  %v999_v32 = vrot.slane %v924_v13, 1  ;;  %v1843_v36 = vpack.c.bf16 %v1179_v7, %v1177_v6 }
 0x1f8   : > { %v1002_v18 = vrot.slane %v925_v15, 1  ;;  %v857_v44 = vld [vmem:[#allocation2 + $0x8] sm:$0xff]  ;;  %v892_v15 = vld [vmem:[#allocation6 + $0x100] sm:$0xff] }
 0x1f9   : > { %v1001_v27 = vsel %vm450_vm0, %v999_v32, %v1000_v20  ;;  %v895_v13 = vld [vmem:[#allocation6 + $0x118] sm:$0xff]  ;;  %v894_v32 = vld [vmem:[#allocation6 + $0x110] sm:$0xff] }
 0x1fa   : > { %v1004_v22 = vsel %vm450_vm0, %v1002_v18, %v1003_v19  ;;  %v926_v24 = vld [vmem:[#allocation2 + $0x20] sm:$0x1]  ;;  %v1807_v41 = vpack.c.bf16 %v895_v13, %v893_v10  ;;  %v1809_v18 = vpack.c.bf16 %v894_v32, %v892_v15  ;;  %v1215_v6 = vld [vmem:[#allocation6 + $0x558] sm:$0xff] }
 0x1fb   : > { %1077 = vmatprep.mubr.f32.mxu1 %v1004_v22  ;;  %v927_v28 = vld [vmem:[#allocation2 + $0x28] sm:$0x1]  ;;  %v1005_v29 = vrot.slane %v926_v24, 1  ;;  %v901_v22 = vld [vmem:[#allocation6 + $0x148] sm:$0xff]  ;;  %v1178_v10 = vld [vmem:[#allocation6 + $0x430] sm:$0xff] }
 0x1fc   : > { %1078 = vmatmul.mubr.f32.vlgmr.msra.gmra.mrb[0].mxu1 %v1001_v27  ;;  %v1007_v33 = vrot.slane %v927_v28, 1  ;;  %v902_v27 = vld [vmem:[#allocation6 + $0x150] sm:$0xff]  ;;  %v905_v28 = vld [vmem:[#allocation6 + $0x168] sm:$0xff]  ;;  %v1845_v32 = vpack.c.bf16 %v1178_v10, %v1176_v9  ;;  %v1219_v10 = vld [vmem:[#allocation6 + $0x578] sm:$0xff] }
 0x1fd   : > { %1778 = vmatpush1.bf16.msra.mxu1 %v1777_v21  ;;  %v1006_v40 = vsel %vm450_vm0, %v1000_v20, %v1005_v29  ;;  %v896_v20 = vld [vmem:[#allocation6 + $0x120] sm:$0xff]  ;;  %v898_v21 = vld [vmem:[#allocation6 + $0x130] sm:$0xff]  ;;  %v907_v29 = vld [vmem:[#allocation6 + $0x178] sm:$0xff]  ;;  %v1817_v30 = vpack.c.bf16 %v902_v27, %v900_v26 }
 0x1fe   : > { %v1008_v35 = vsel %vm450_vm0, %v1003_v19, %v1007_v33  ;;  %1780 = vmatprep.subr.bf16.mxu1 %v1779_v23  ;;  %v1811_v19 = vpack.c.bf16 %v899_v17, %v897_v16  ;;  %v903_v23 = vld [vmem:[#allocation6 + $0x158] sm:$0xff]  ;;  %v1813_v24 = vpack.c.bf16 %v898_v21, %v896_v20  ;;  %v1819_v31 = vpack.c.bf16 %v907_v29, %v905_v28  ;;  %v904_v33 = vld [vmem:[#allocation6 + $0x160] sm:$0xff]  ;;  %v856_v13 = vld [vmem:[#allocation2] sm:$0xff] }
 0x1ff   : > { %1083 = vmatprep.mubr.f32.mxu1 %v1008_v35  ;;  %v1815_v25 = vpack.c.bf16 %v903_v23, %v901_v22  ;;  %v909_v35 = vld [vmem:[#allocation6 + $0x188] sm:$0xff]  ;;  %v1244_v16 = vrot.slane %v2342_v12, 2  ;;  %v1187_v21 = vld [vmem:[#allocation6 + $0x478] sm:$0xff]  ;;  %v1186_v26 = vld [vmem:[#allocation6 + $0x470] sm:$0xff] }
 0x200   : > { %1084 = vmatmul.mubr.f32.gmra.mrb[2].mxu1 %v1006_v40  ;;  %v908_v40 = vld [vmem:[#allocation6 + $0x180] sm:$0xff]  ;;  %v1185_v20 = vld [vmem:[#allocation6 + $0x468] sm:$0xff]  ;;  %v1191_v28 = vld [vmem:[#allocation6 + $0x498] sm:$0xff] }
 0x201   : > { %1782 = vmatpush1.bf16.msra.mxu1 %v1781_v34  ;;  %1154 = vmatprep.mubr.f32.mxu1 %v857_v44  ;;  %v906_v34 = vld [vmem:[#allocation6 + $0x170] sm:$0xff]  ;;  %v915_v44 = vld [vmem:[#allocation6 + $0x1b8] sm:$0xff]  ;;  %v1189_v27 = vld [vmem:[#allocation6 + $0x488] sm:$0xff] }
 0x202   : > { %1784 = vmatprep.subr.bf16.mxu1 %v1783_v37  ;;  %v911_v37 = vld [vmem:[#allocation6 + $0x198] sm:$0xff]  ;;  %v1821_v38 = vpack.c.bf16 %v906_v34, %v904_v33  ;;  %v1190_v33 = vld [vmem:[#allocation6 + $0x490] sm:$0xff]  ;;  %v1193_v34 = vld [vmem:[#allocation6 + $0x4a8] sm:$0xff] }
 0x203   : > { %v1823_v39 = vpack.c.bf16 %v911_v37, %v909_v35  ;;  %v1195_v35 = vld [vmem:[#allocation6 + $0x4b8] sm:$0xff]  ;;  %v1217_v9 = vld [vmem:[#allocation6 + $0x568] sm:$0xff] }
 0x205   : > { %1786 = vmatpush1.bf16.msra.mxu1 %v1785_v45  ;;  %v1825_v45 = vpack.c.bf16 %v910_v42, %v908_v40  ;;  %v1194_v40 = vld [vmem:[#allocation6 + $0x4b0] sm:$0xff]  ;;  %v1197_v42 = vld [vmem:[#allocation6 + $0x4c8] sm:$0xff] }
 0x206   : > { %1788 = vmatprep.subr.bf16.mxu1 %v1787_v47  ;;  %v1827_v47 = vpack.c.bf16 %v915_v44, %v913_v43  ;;  %v1199_v43 = vld [vmem:[#allocation6 + $0x4d8] sm:$0xff] }
 0x209   : > { %1790 = vmatpush1.bf16.msra.mxu1 %v1789_v54  ;;  %v1829_v54 = vpack.c.bf16 %v914_v50, %v912_v48  ;;  %v1198_v48 = vld [vmem:[#allocation6 + $0x4d0] sm:$0xff]  ;;  %v1201_v50 = vld [vmem:[#allocation6 + $0x4e8] sm:$0xff] }
 0x20a   : > { %1792 = vmatprep.subr.bf16.mxu1 %v1791_v55  ;;  %v1831_v55 = vpack.c.bf16 %v919_v53, %v917_v52  ;;  %v1203_v52 = vld [vmem:[#allocation6 + $0x4f8] sm:$0xff] }
 0x20d   : > { %1794 = vmatpush1.bf16.msra.mxu1 %v1793_v60  ;;  %v1833_v60 = vpack.c.bf16 %v918_v57, %v916_v56  ;;  %v1202_v56 = vld [vmem:[#allocation6 + $0x4f0] sm:$0xff]  ;;  %v1205_v57 = vld [vmem:[#allocation6 + $0x508] sm:$0xff] }
 0x20e   : > { %1796 = vmatprep.subr.bf16.mxu1 %v1795_v61  ;;  %v1835_v61 = vpack.c.bf16 %v923_v59, %v921_v58  ;;  %v1207_v58 = vld [vmem:[#allocation6 + $0x518] sm:$0xff] }
 0x211   : > { %1798 = vmatpush1.bf16.msra.mxu1 %v1797_v2  ;;  %v1837_v2 = vpack.c.bf16 %v922_v63, %v920_v62  ;;  %v1206_v62 = vld [vmem:[#allocation6 + $0x510] sm:$0xff]  ;;  %v1209_v63 = vld [vmem:[#allocation6 + $0x528] sm:$0xff] }
 0x212   : > { %1800 = vmatprep.subr.bf16.mxu1 %v1799_v3  ;;  %v1839_v3 = vpack.c.bf16 %v1175_v1, %v1173_v0  ;;  %v1211_v0 = vld [vmem:[#allocation6 + $0x538] sm:$0xff] }
 0x215   : > { %1802 = vmatpush1.bf16.msra.mxu1 %v1801_v8  ;;  %v1841_v8 = vpack.c.bf16 %v1174_v5, %v1172_v4  ;;  %v1210_v4 = vld [vmem:[#allocation6 + $0x530] sm:$0xff]  ;;  %v1213_v5 = vld [vmem:[#allocation6 + $0x548] sm:$0xff] }
 0x216   : > { %1804 = vmatprep.subr.bf16.mxu1 %v1803_v46  ;;  %v1168_v46 = vld [vmem:[#allocation2 + $0x8] sm:$0xfc] }
 0x217   : > { %v1243_v15 = vrot.slane %v1168_v46, 2  ;;  %v1212_v46 = vld [vmem:[#allocation6 + $0x540] sm:$0xff] }
 0x219   : > { %1806 = vmatpush1.bf16.msra.mxu1 %v1805_v14  ;;  %v1181_v14 = vld [vmem:[#allocation6 + $0x448] sm:$0xff]  ;;  %v1245_v22 = vsel %vm692_vm1, %v1243_v15, %v1244_v16  ;;  %v1218_v15 = vld [vmem:[#allocation6 + $0x570] sm:$0xff] }
 0x21a   : > { %1808 = vmatprep.subr.bf16.mxu1 %v1807_v41  ;;  %v1183_v41 = vld [vmem:[#allocation6 + $0x458] sm:$0xff] }
 0x21b   : > { %v1847_v17 = vpack.c.bf16 %v1183_v41, %v1181_v14  ;;  %v1883_v14 = vpack.c.bf16 %v1219_v10, %v1217_v9  ;;  %v1216_v41 = vld [vmem:[#allocation6 + $0x560] sm:$0xff] }
 0x21d   : > { %1810 = vmatpush1.bf16.msra.mxu1 %v1809_v18  ;;  %v1180_v18 = vld [vmem:[#allocation6 + $0x440] sm:$0xff] }
 0x21e   : > { %1812 = vmatprep.subr.bf16.mxu1 %v1811_v19  ;;  %v1182_v19 = vld [vmem:[#allocation6 + $0x450] sm:$0xff] }
 0x21f   : > { %v1849_v23 = vpack.c.bf16 %v1182_v19, %v1180_v18  ;;  %v1885_v18 = vpack.c.bf16 %v1218_v15, %v1216_v41 }
 0x221   : > { %1814 = vmatpush1.bf16.msra.mxu1 %v1813_v24  ;;  %v1851_v24 = vpack.c.bf16 %v1187_v21, %v1185_v20  ;;  %v1220_v20 = vld [vmem:[#allocation6 + $0x580] sm:$0xff]  ;;  %v1222_v21 = vld [vmem:[#allocation6 + $0x590] sm:$0xff] }
 0x222   : > { %1816 = vmatprep.subr.bf16.mxu1 %v1815_v25  ;;  %v1184_v25 = vld [vmem:[#allocation6 + $0x460] sm:$0xff] }
 0x223   : > { %v1853_v29 = vpack.c.bf16 %v1186_v26, %v1184_v25  ;;  %v1224_v26 = vld [vmem:[#allocation6 + $0x5a0] sm:$0xff] }
 0x225   : > { %1818 = vmatpush1.bf16.msra.mxu1 %v1817_v30  ;;  %v1855_v30 = vpack.c.bf16 %v1191_v28, %v1189_v27  ;;  %v1226_v27 = vld [vmem:[#allocation6 + $0x5b0] sm:$0xff]  ;;  %v1229_v28 = vld [vmem:[#allocation6 + $0x5c8] sm:$0xff] }
 0x226   : > { %1820 = vmatprep.subr.bf16.mxu1 %v1819_v31  ;;  %v1188_v31 = vld [vmem:[#allocation6 + $0x480] sm:$0xff] }
 0x227   : > { %v1857_v37 = vpack.c.bf16 %v1190_v33, %v1188_v31  ;;  %v1228_v33 = vld [vmem:[#allocation6 + $0x5c0] sm:$0xff] }
 0x229   : > { %1822 = vmatpush1.bf16.msra.mxu1 %v1821_v38  ;;  %v1859_v38 = vpack.c.bf16 %v1195_v35, %v1193_v34  ;;  %v1230_v34 = vld [vmem:[#allocation6 + $0x5d0] sm:$0xff]  ;;  %v1233_v35 = vld [vmem:[#allocation6 + $0x5e8] sm:$0xff] }
 0x22a   : > { %1824 = vmatprep.subr.bf16.mxu1 %v1823_v39  ;;  %v1192_v39 = vld [vmem:[#allocation6 + $0x4a0] sm:$0xff] }
 0x22b   : > { %v1861_v44 = vpack.c.bf16 %v1194_v40, %v1192_v39  ;;  %v1232_v40 = vld [vmem:[#allocation6 + $0x5e0] sm:$0xff] }
 0x22d   : > { %1826 = vmatpush1.bf16.msra.mxu1 %v1825_v45  ;;  %v1863_v45 = vpack.c.bf16 %v1199_v43, %v1197_v42  ;;  %v1234_v42 = vld [vmem:[#allocation6 + $0x5f0] sm:$0xff] }
 0x22e   : > { %1828 = vmatprep.subr.bf16.mxu1 %v1827_v47  ;;  %v1196_v47 = vld [vmem:[#allocation6 + $0x4c0] sm:$0xff]  ;;  %v1167_v43 = vld [vmem:[#allocation2] sm:$0xfc] }
 0x22f   : > { %v1865_v53 = vpack.c.bf16 %v1198_v48, %v1196_v47  ;;  %v1240_v47 = vrot.slane %v1167_v43, 2 }
 0x231   : > { %1830 = vmatpush1.bf16.msra.mxu1 %v1829_v54  ;;  %v1867_v54 = vpack.c.bf16 %v1203_v52, %v1201_v50  ;;  %v1169_v50 = vld [vmem:[#allocation2 + $0x20] sm:$0x3]  ;;  %v1241_v52 = vrot.slane %v2340_v11, 2 }
 0x232   : > { %1832 = vmatprep.subr.bf16.mxu1 %v1831_v55  ;;  %v1200_v55 = vld [vmem:[#allocation6 + $0x4e0] sm:$0xff] }
 0x233   : > { %v1869_v59 = vpack.c.bf16 %v1202_v56, %v1200_v55 }
 0x235   : > { %1834 = vmatpush1.bf16.msra.mxu1 %v1833_v60  ;;  %v1871_v60 = vpack.c.bf16 %v1207_v58, %v1205_v57  ;;  %v1335_v57 = vld [vmem:[%s2441_s5] sm:$0x3] }
 0x236   : > { %1836 = vmatprep.subr.bf16.mxu1 %v1835_v61  ;;  %v1204_v61 = vld [vmem:[#allocation6 + $0x500] sm:$0xff]  ;;  %v1367_v58 = vld [vmem:[%s2286_s17] sm:$0xfe] }
 0x237   : > { %v1873_v1 = vpack.c.bf16 %v1206_v62, %v1204_v61  ;;  %v1379_v61 = vrot.slane %v1367_v58, 1 }
 0x239   : > { %1838 = vmatpush1.bf16.msra.mxu1 %v1837_v2  ;;  %v1875_v2 = vpack.c.bf16 %v1211_v0, %v1209_v63  ;;  %v1344_v63 = vrot.slane %v1335_v57, %v2331_v51 }
 0x23a   : > { %1840 = vmatprep.subr.bf16.mxu1 %v1839_v3  ;;  %v1208_v3 = vld [vmem:[#allocation6 + $0x520] sm:$0xff] }
 0x23b   : > { %v1877_v7 = vpack.c.bf16 %v1210_v4, %v1208_v3  ;;  %v1371_v3 = vld [vmem:[%s2286_s17 + $0x20] sm:$0x1] }
 0x23c   : > { %1155 = vmatmul.mubr.f32.vlgmr.msra.gmra.mrb[0].mxu1 %v856_v13  ;;  %v1385_v9 = vrot.slane %v1371_v3, 1 }
 0x23d   : > { %1160 = vmatprep.mubr.f32.mxu1 %v2342_v12  ;;  %1842 = vmatpush1.bf16.msra.mxu1 %v1841_v8  ;;  %v1879_v8 = vpack.c.bf16 %v1215_v6, %v1213_v5  ;;  %v1368_v12 = vld [vmem:[%s2286_s17 + $0x8] sm:$0xfe]  ;;  %v1372_v6 = vld [vmem:[%s2286_s17 + $0x28] sm:$0x1] }
 0x23e   : > { %1844 = vmatprep.subr.bf16.mxu1 %v1843_v36  ;;  %v1214_v36 = vld [vmem:[#allocation6 + $0x550] sm:$0xff] }
 0x23f   : > { %v1881_v13 = vpack.c.bf16 %v1214_v36, %v1212_v46 }
 0x240   : > { %1161 = vmatmul.mubr.f32.gmra.mrb[2].mxu1 %v2340_v11  ;;  %v1369_v11 = vld [vmem:[%s2286_s17 + $0x10] sm:$0xff] }
 0x241   : > { %1846 = vmatpush1.bf16.msra.mxu1 %v1845_v32  ;;  %1318 = vmatprep.mubr.f32.mxu1 %v1245_v22  ;;  %v1221_v32 = vld [vmem:[#allocation6 + $0x588] sm:$0xff]  ;;  %v1380_v62 = vrot.slane %v1369_v11, 1 }
 0x242   : > { %1848 = vmatprep.subr.bf16.mxu1 %v1847_v17  ;;  %v1223_v17 = vld [vmem:[#allocation6 + $0x598] sm:$0xff]  ;;  %v1225_v22 = vld [vmem:[#allocation6 + $0x5a8] sm:$0xff] }
 0x243   : > { %v1887_v19 = vpack.c.bf16 %v1223_v17, %v1221_v32  ;;  %v1381_v46 = vsel %vm450_vm0, %v1379_v61, %v1380_v62 }
 0x245   : > { %1850 = vmatpush1.bf16.msra.mxu1 %v1849_v23  ;;  %v1227_v23 = vld [vmem:[#allocation6 + $0x5b8] sm:$0xff] }
 0x246   : > { %1852 = vmatprep.subr.bf16.mxu1 %v1851_v24  ;;  %v1889_v24 = vpack.c.bf16 %v1222_v21, %v1220_v20  ;;  %v1891_v25 = vpack.c.bf16 %v1227_v23, %v1225_v22 }
 0x249   : > { %1854 = vmatpush1.bf16.msra.mxu1 %v1853_v29  ;;  %v1231_v29 = vld [vmem:[#allocation6 + $0x5d8] sm:$0xff] }
 0x24a   : > { %1856 = vmatprep.subr.bf16.mxu1 %v1855_v30  ;;  %v1893_v30 = vpack.c.bf16 %v1226_v27, %v1224_v26  ;;  %v1895_v31 = vpack.c.bf16 %v1231_v29, %v1229_v28 }
 0x24d   : > { %1858 = vmatpush1.bf16.msra.mxu1 %v1857_v37  ;;  %v1235_v37 = vld [vmem:[#allocation6 + $0x5f8] sm:$0xff] }
 0x24e   : > { %1860 = vmatprep.subr.bf16.mxu1 %v1859_v38  ;;  %v1897_v38 = vpack.c.bf16 %v1230_v34, %v1228_v33  ;;  %v1899_v39 = vpack.c.bf16 %v1235_v37, %v1233_v35 }
 0x251   : > { %1862 = vmatpush1.bf16.msra.mxu1 %v1861_v44  ;;  %v1901_v44 = vpack.c.bf16 %v1234_v42, %v1232_v40 }
 0x252   : > { %1864 = vmatprep.subr.bf16.mxu1 %v1863_v45  ;;  %v1170_v45 = vld [vmem:[#allocation2 + $0x28] sm:$0x3] }
 0x253   : > { %v1248_v48 = vrot.slane %v1170_v45, 2 }
 0x255   : > { %1866 = vmatpush1.bf16.msra.mxu1 %v1865_v53  ;;  %v1242_v53 = vsel %vm692_vm1, %v1240_v47, %v1241_v52  ;;  %v1249_v55 = vsel %vm692_vm1, %v1244_v16, %v1248_v48  ;;  %v1340_v16 = vrot.slane %v1335_v57, %v2326_v49 }
 0x256   : > { %1868 = vmatprep.subr.bf16.mxu1 %v1867_v54  ;;  %v1246_v54 = vrot.slane %v1169_v50, 2 }
 0x258   : > { %v1247_v56 = vsel %vm692_vm1, %v1241_v52, %v1246_v54 }
 0x259   : > { %1870 = vmatpush1.bf16.msra.mxu1 %v1869_v59  ;;  %v1351_v59 = vld [vmem:[%s2442_s6] sm:$0x3] }
 0x25a   : > { %1872 = vmatprep.subr.bf16.mxu1 %v1871_v60  ;;  %v1370_v60 = vld [vmem:[%s2286_s17 + $0x18] sm:$0xff]  ;;  %v1356_v0 = vrot.slane %v1351_v59, %v2326_v49  ;;  %v1360_v5 = vrot.slane %v1351_v59, %v2331_v51  ;;  %v1387_v49 = vrot.slane %v1372_v6, 1 }
 0x25d   : > { %1874 = vmatpush1.bf16.msra.mxu1 %v1873_v1  ;;  %v1382_v1 = vrot.slane %v1368_v12, 1 }
 0x25e   : > { %1876 = vmatprep.subr.bf16.mxu1 %v1875_v2  ;;  %v1383_v2 = vrot.slane %v1370_v60, 1 }
 0x260   : > { %v1388_v22 = vsel %vm450_vm0, %v1383_v2, %v1387_v49 }
 0x261   : > { %1878 = vmatpush1.bf16.msra.mxu1 %v1877_v7 }
 0x262   : > { %1880 = vmatprep.subr.bf16.mxu1 %v1879_v8 }
 0x265   : > { %1882 = vmatpush1.bf16.msra.mxu1 %v1881_v13  ;;  %v1384_v13 = vsel %vm450_vm0, %v1382_v1, %v1383_v2 }
 0x266   : > { %1884 = vmatprep.subr.bf16.mxu1 %v1883_v14 }
 0x269   : > { %1886 = vmatpush1.bf16.msra.mxu1 %v1885_v18  ;;  %v1386_v18 = vsel %vm450_vm0, %v1380_v62, %v1385_v9 }
 0x26a   : > { %1888 = vmatprep.subr.bf16.mxu1 %v1887_v19 }
 0x26d   : > { %1890 = vmatpush1.bf16.msra.mxu1 %v1889_v24 }
 0x26e   : > { %1892 = vmatprep.subr.bf16.mxu1 %v1891_v25 }
 0x271   : > { %1894 = vmatpush1.bf16.msra.mxu1 %v1893_v30 }
 0x272   : > { %1896 = vmatprep.subr.bf16.mxu1 %v1895_v31 }
 0x275   : > { %1898 = vmatpush1.bf16.msra.mxu1 %v1897_v38 }
 0x276   : > { %1900 = vmatprep.subr.bf16.mxu1 %v1899_v39 }
 0x279   : > { %1902 = vmatpush1.bf16.msra.mxu1 %v1901_v44 }
 0x27c   : > { %1319 = vmatmul.mubr.f32.vlgmr.msra.gmra.mrb[0].mxu1 %v1242_v53 }
 0x27d   : > { %1324 = vmatprep.mubr.f32.mxu1 %v1249_v55 }
 0x280   : > { %1325 = vmatmul.mubr.f32.gmra.mrb[2].mxu1 %v1247_v56 }
 0x34f   : > { %v1320_v4 = vpop.f32.mrb[0].mxu1 }
 0x350   : > { %v1347_v7 = vmul.f32 %v1340_v16, %v1320_v4  ;;  %v1322_v8 = vpop.f32.mrb[1].mxu1 }
 0x351   : > { %v1348_v36 = vmul.f32 %v1344_v63, %v1322_v8 }
 0x352   : > { %v1363_v10 = vadd.f32 %v1356_v0, %v1347_v7 }
 0x353   : > { %v1364_v14 = vadd.f32 %v1360_v5, %v1348_v36  ;;  %v1326_v41 = vpop.f32.mrb[2].mxu1 }
 0x354   : > { %v1393_v15 = vadd.f32 %v1381_v46, %v1363_v10  ;;  %v1349_v32 = vmul.f32 %v1340_v16, %v1326_v41  ;;  %v1328_v17 = vpop.f32.mrb[3].mxu1 }
 0x355   : > { %v1394_v51 = vadd.f32 %v1384_v13, %v1364_v14  ;;  %v1350_v19 = vmul.f32 %v1344_v63, %v1328_v17 }
 0x356   : > { %v1397_v20 = vmax.f32 %v1393_v15, 0.0  ;;  %v1365_v21 = vadd.f32 %v1356_v0, %v1349_v32 }
 0x357   : > { %v1398_v23 = vmax.f32 %v1394_v51, 0.0  ;;  %v1366_v24 = vadd.f32 %v1360_v5, %v1350_v19 }
 0x358   : > { %1401 = vst [vmem:[%s301_s13] sm:$0xff] %v1397_v20  ;;  %v1395_v25 = vadd.f32 %v1386_v18, %v1365_v21 }
 0x359   : > { %1402 = vst [vmem:[%s301_s13 + $0x8] sm:$0xff] %v1398_v23  ;;  %v1396_v26 = vadd.f32 %v1388_v22, %v1366_v24 }
 0x35a   : > { %v1399_v27 = vmax.f32 %v1395_v25, 0.0 }
 0x35b   : > { %v1400_v28 = vmax.f32 %v1396_v26, 0.0 }
 0x35c   : > { %1403 = vst [vmem:[%s301_s13 + $0x10] sm:$0xff] %v1399_v27 }
 0x35d   : > { %1404 = vst [vmem:[%s301_s13 + $0x18] sm:$0xff] %v1400_v28 }
 0x35e   : > { %2054 = shalt.err (!%p2051_p11)
}
 0x35f   : > { %s2055_s8 = scalar_lea.hbm %s2391_s20, 512  ;;  %s2059_s10 = scalar_lea.hbm %s2443_s7, 1024 }
 0x360   : > { %p2056_p13 = scmp.ne.s32.totalorder %s2391_s20, %s2055_s8  ;;  %p2060_p6 = scmp.lt.u32.totalorder %s2391_s20, %s2443_s7 }
 0x361   : > { %p2061_p9 = scmp.lt.u32.totalorder %s2059_s10, %s2055_s8  ;;  %p2063_p10 = scmp.lt.u32.totalorder %s2055_s8, %s2391_s20 }
 0x362   : > { %p2057_p5 = pnand %p2056_p13, %p2457_p1 }
 0x363   : > { %p2062_p12 = por %p2061_p9, %p2060_p6 }
 0x364   : > { %p2058_p0 = pneg %p2057_p5 }
 0x365   : > { %p2064_p2 = por %p2063_p10, %p2062_p12 }
 0x367   : > { %p2065_p3 = pnand %p2064_p2, %p2058_p0 }
 0x369   : > { %2068 = shalt.err (!%p2065_p3)
}
 0x36a   : > { %s2119_s18 = smov 256   ;;  %s2120_s14 = smov 16  }
 0x36b   : > { %1928 = dma.vmem_to_hbm [thread:$0]  (%p2457_p1), %s2386_s16, 512, %s2391_s20, %s2395_s21, %s2119_s18, %s2119_s18, %s2120_s14  }
 0x36c PF: > { %p1945_p4 = scmp.ge.s32.totalorder %s2111_s27, 2  ;;  %s1434_s17 = sand.u32 1, %s2099_s24  }
 0x36d   : > { %p2458_p7 = scmp.ne.s32.totalorder %s2449_s12, 0  ;;  %s1435_s28 = scalar_lea.sflag [#allocation5], %s1434_s17 }
 0x36f   : > { %p1938_p8 = pnand %p1945_p4, %p2458_p7 }
 0x371   : > { %2094 = dma.done.wait (!%p1938_p8), %s1435_s28, 512  }
 0x372   : > { %2096 = vsyncadd (!%p1938_p8), %s1435_s28, 4294966784  ;;  %s2459_s22 = sld [smem:[#allocation12_spill]]  ;;  %p19_p11 = scmp.ge.s32.totalorder %s2186_s30, 4  }
 0x373   : > { %s2460_s24 = smov %s2103_s25  ;;  %s2461_s25 = smov %s2107_s26 }
 0x374   : > { %s2463_s27 = smov %s2186_s30  ;;  %21 = sbr.rel (!%p19_p11) target bundleno = 5 (0x5), region = 97 }
 0x378   : > { %s2462_s26 = smov %s2459_s22 }
 0x37b   :  { %1440 = vsyncpa [#allocation4], 1 }
 0x37c   :  { %1442 = vsyncpa [#allocation4 + $0x1], 1 }
 0x37d   :  { %1443 = vsyncpa [#allocation7], 1 }
 0x37e   :  { %1444 = vsyncpa [#allocation5], 1 }
 0x37f   :  { %1446 = vsyncpa [#allocation5 + $0x1], 1 }

</bundles_post_ra>
